<compile_context>
chip_gen: v6e
topology: v6e:2x2x1
jax: 0.10.0
libtpu: 0.0.40
codegen_flags: <defaults>
</compile_context>

<pallas_src>
import functools
import math

import jax
import jax.numpy as jnp
import numpy as np
from jax.experimental import pallas as pl
from jax.experimental.pallas import tpu as pltpu

MXU_DTYPE = jnp.bfloat16   # matmul operand dtype (accumulation stays f32)
ACT_DTYPE = jnp.bfloat16   # inter-layer activation storage dtype

_PARALLEL = pltpu.CompilerParams(dimension_semantics=("parallel",))


# ----------------------------------------------------------------------------
# Pallas kernels (one grid step == one batch element, full time axis in VMEM)
# ----------------------------------------------------------------------------
def _conv1x1_kernel(x_ref, w_ref, b_ref, o_ref):
    """o = x @ w + b.   x:(1,T,Cin)  w:(Cin,Cout)  b:(1,Cout)  o:(1,T,Cout)."""
    x = x_ref[0].astype(MXU_DTYPE)
    w = w_ref[...].astype(MXU_DTYPE)
    acc = jnp.dot(x, w, preferred_element_type=jnp.float32)
    acc = acc + b_ref[...].astype(jnp.float32)
    o_ref[0] = acc.astype(o_ref.dtype)


def _res_layer_kernel(xp_ref, wd_ref, bd_ref, w1_ref, b1_ref, o_ref, *, d, T):
    """Fused DilatedResidualLayer for one batch element.

    xp_ref : (1, T + 2*d, C)   halo-padded input (pad = dilation on each side)
    wd_ref : (3, C, C)         dilated-conv taps, already (k, Cin, Cout)
    w1_ref : (C, C)            1x1 conv
    o_ref  : (1, T, C)         x + conv1x1(relu(conv_dilated(x)))

    ReLU applies only to the dilated-conv output (matches the PyTorch layer);
    the residual is added after the 1x1 conv with no extra ReLU.  The
    intermediate `h` stays on-chip and the 3 taps are slices of the halo
    block, so no im2col copy ever touches HBM.
    """
    f32 = jnp.float32
    xp = xp_ref[0].astype(f32)                                    # (T+2d, C)
    acc = jnp.dot(xp[0:T, :].astype(MXU_DTYPE),
                  wd_ref[0].astype(MXU_DTYPE),
                  preferred_element_type=f32)
    for k in (1, 2):
        acc = acc + jnp.dot(xp[k * d:k * d + T, :].astype(MXU_DTYPE),
                            wd_ref[k].astype(MXU_DTYPE),
                            preferred_element_type=f32)
    h = jnp.maximum(acc + bd_ref[...].astype(f32), 0.0)
    y = jnp.dot(h.astype(MXU_DTYPE), w1_ref[...].astype(MXU_DTYPE),
                preferred_element_type=f32)
    y = y + b1_ref[...].astype(f32) + xp[d:d + T, :]              # + residual
    o_ref[0] = y.astype(o_ref.dtype)


def _conv_out_kernel(xe_ref, xo_ref, w_ref, b_ref, o_ref, *, T_out):
    """Fused Conv1d(k=3, stride=2, padding=1) + ReLU for one batch element.

    The stride-2 gather is an even/odd decomposition of the padded input:
      out[t] = relu(xp[2t] @ w0 + xp[2t+1] @ w1 + xp[2t+2] @ w2 + b)
    with xe = xp[0::2], xo = xp[1::2].
    """
    f32 = jnp.float32
    xe = xe_ref[0].astype(f32)
    xo = xo_ref[0].astype(f32)
    acc = jnp.dot(xe[0:T_out, :].astype(MXU_DTYPE),
                  w_ref[0].astype(MXU_DTYPE), preferred_element_type=f32)
    acc = acc + jnp.dot(xo[0:T_out, :].astype(MXU_DTYPE),
                        w_ref[1].astype(MXU_DTYPE), preferred_element_type=f32)
    acc = acc + jnp.dot(xe[1:T_out + 1, :].astype(MXU_DTYPE),
                        w_ref[2].astype(MXU_DTYPE), preferred_element_type=f32)
    acc = jnp.maximum(acc + b_ref[...].astype(f32), 0.0)
    o_ref[0] = acc.astype(o_ref.dtype)


# ----------------------------------------------------------------------------
# Conv wrappers (channels-last, thin XLA glue + one pallas_call each)
# ----------------------------------------------------------------------------
def conv1x1_in(x, w, b):
    """nn.Conv1d(Cin, Cout, 1).  x:(B,T,Cin)  w:(Cout,Cin,1)  b:(Cout,)."""
    B, T, Cin = x.shape
    Cout = w.shape[0]
    w2 = jnp.transpose(w[:, :, 0])                   # (Cin, Cout)
    return pl.pallas_call(
        _conv1x1_kernel,
        out_shape=jax.ShapeDtypeStruct((B, T, Cout), ACT_DTYPE),
        grid_spec=pl.GridSpec(
            grid=(B,),
            in_specs=[pl.BlockSpec((1, T, Cin), lambda i: (i, 0, 0)),
                      pl.BlockSpec((Cin, Cout), lambda i: (0, 0)),
                      pl.BlockSpec((1, Cout), lambda i: (0, 0))],
            out_specs=pl.BlockSpec((1, T, Cout), lambda i: (i, 0, 0))),
        compiler_params=_PARALLEL,
    )(x, w2, b.reshape(1, Cout))


def dilated_residual_layer(x, wd, bd, w1, b1, dilation):
    """x + conv1x1(relu(dilated_conv3(x))) fused into one kernel."""
    B, T, C = x.shape
    d = dilation
    xp = jnp.pad(x, ((0, 0), (d, d), (0, 0)))        # time halo
    wd_t = jnp.transpose(wd, (2, 1, 0))              # (3, Cin, Cout)
    w1_t = jnp.transpose(w1[:, :, 0])                # (Cin, Cout)
    kernel = functools.partial(_res_layer_kernel, d=d, T=T)
    return pl.pallas_call(
        kernel,
        out_shape=jax.ShapeDtypeStruct((B, T, C), ACT_DTYPE),
        grid_spec=pl.GridSpec(
            grid=(B,),
            in_specs=[pl.BlockSpec((1, T + 2 * d, C), lambda i: (i, 0, 0)),
                      pl.BlockSpec((3, C, C), lambda i: (0, 0, 0)),
                      pl.BlockSpec((1, C), lambda i: (0, 0)),
                      pl.BlockSpec((C, C), lambda i: (0, 0)),
                      pl.BlockSpec((1, C), lambda i: (0, 0))],
            out_specs=pl.BlockSpec((1, T, C), lambda i: (i, 0, 0))),
        compiler_params=_PARALLEL,
    )(xp, wd_t, bd.reshape(1, C), w1_t, b1.reshape(1, C))


def strided_conv_out(x, w, b):
    """relu(nn.Conv1d(C, Cout, 3, stride=2, padding=1)(x))."""
    B, T, C = x.shape
    Cout = w.shape[0]
    T_out = (T - 1) // 2 + 1
    xp = jnp.pad(x, ((0, 0), (1, 1), (0, 0)))
    xe = xp[:, 0::2, :]                              # rows 2t   of padded x
    xo = xp[:, 1::2, :]                              # rows 2t+1 of padded x
    w_t = jnp.transpose(w, (2, 1, 0))                # (3, Cin, Cout)
    Te, To = xe.shape[1], xo.shape[1]
    kernel = functools.partial(_conv_out_kernel, T_out=T_out)
    return pl.pallas_call(
        kernel,
        out_shape=jax.ShapeDtypeStruct((B, T_out, Cout), ACT_DTYPE),
        grid_spec=pl.GridSpec(
            grid=(B,),
            in_specs=[pl.BlockSpec((1, Te, C), lambda i: (i, 0, 0)),
                      pl.BlockSpec((1, To, C), lambda i: (i, 0, 0)),
                      pl.BlockSpec((3, C, Cout), lambda i: (0, 0, 0)),
                      pl.BlockSpec((1, Cout), lambda i: (0, 0))],
            out_specs=pl.BlockSpec((1, T_out, Cout), lambda i: (i, 0, 0))),
        compiler_params=_PARALLEL,
    )(xe, xo, w_t, b.reshape(1, Cout))


# ----------------------------------------------------------------------------
# Model: parameters + forward (mirrors MultiStageModel / SingleStageModel)
# ----------------------------------------------------------------------------
def init_conv_params(key, out_c, in_c, kernel_size):
    k1, k2 = jax.random.split(key)
    bound = 1.0 / math.sqrt(in_c * kernel_size)
    w = jax.random.uniform(k1, (out_c, in_c, kernel_size),
                           minval=-bound, maxval=bound, dtype=jnp.float32)
    b = jax.random.uniform(k2, (out_c,),
                           minval=-bound, maxval=bound, dtype=jnp.float32)
    return w, b


def init_single_stage(key, num_layers, num_f_maps, dim, num_classes):
    keys = jax.random.split(key, 2 * num_layers + 2)
    params = {"conv_in": init_conv_params(keys[0], num_f_maps, dim, 1),
              "layers": []}
    for i in range(num_layers):
        wd = init_conv_params(keys[1 + 2 * i], num_f_maps, num_f_maps, 3)
        w1 = init_conv_params(keys[2 + 2 * i], num_f_maps, num_f_maps, 1)
        params["layers"].append((wd, w1))
    params["conv_out"] = init_conv_params(keys[-1], num_classes, num_f_maps, 3)
    return params


def single_stage_forward(params, x_btc):
    w, b = params["conv_in"]
    out = conv1x1_in(x_btc, w, b)
    for i, ((wd, bd), (w1, b1)) in enumerate(params["layers"]):
        out = dilated_residual_layer(out, wd, bd, w1, b1, dilation=2 ** i)
    wo, bo = params["conv_out"]
    return strided_conv_out(out, wo, bo)


def multi_stage_forward(params, x_btd):
    # PyTorch permutes (B,T,dim)->(B,dim,T); we stay channels-last throughout,
    # so the final layout already matches out.permute(0, 2, 1).
    out = single_stage_forward(params["stage1"], x_btd)
    for sp in params["stages"]:
        out = single_stage_forward(sp, out)
    return out.astype(jnp.float32)


# ----------------------------------------------------------------------------
# Pure-JAX f32 reference (lax.conv_general_dilated) for correctness check
# ----------------------------------------------------------------------------
def _ref_conv1d(x_nct, w, b, stride=1, padding=0, dilation=1):
    out = jax.lax.conv_general_dilated(
        x_nct, w, window_strides=(stride,), padding=[(padding, padding)],
        rhs_dilation=(dilation,), dimension_numbers=("NCH", "OIH", "NCH"))
    return out + b[None, :, None]


def _ref_single_stage(params, x_nct):
    w, b = params["conv_in"]
    out = _ref_conv1d(x_nct, w, b)
    for i, ((wd, bd), (w1, b1)) in enumerate(params["layers"]):
        d = 2 ** i
        h = jax.nn.relu(_ref_conv1d(out, wd, bd, padding=d, dilation=d))
        h = _ref_conv1d(h, w1, b1)
        out = out + h
    wo, bo = params["conv_out"]
    return jax.nn.relu(_ref_conv1d(out, wo, bo, stride=2, padding=1))


def _ref_multi_stage(params, x_btd):
    x = jnp.transpose(x_btd, (0, 2, 1))
    out = _ref_single_stage(params["stage1"], x)
    for sp in params["stages"]:
        out = _ref_single_stage(sp, out)
    return jnp.transpose(out, (0, 2, 1))


# ----------------------------------------------------------------------------
if __name__ == "__main__":
    B, T = 2, 16
    num_stages, num_layers, num_f_maps, dim, num_classes = 2, 2, 32, 32, 8

    key = jax.random.PRNGKey(0)
    kx, kp = jax.random.split(key)
    x = jax.random.normal(kx, (B, T, dim), dtype=jnp.float32)

    pkeys = jax.random.split(kp, num_stages)
    params = {
        "stage1": init_single_stage(pkeys[0], num_layers, num_f_maps, dim,
                                    num_classes),
        "stages": [init_single_stage(pkeys[s], num_layers, num_f_maps,
                                     num_classes, num_classes)
                   for s in range(1, num_stages)],
    }

    fwd = jax.jit(multi_stage_forward)
    out = jax.block_until_ready(fwd(params, x))

    ref = _ref_multi_stage(params, x)
    assert out.shape == ref.shape, (out.shape, ref.shape)
    # bf16 MXU operands + bf16 activation storage -> loosened tolerance vs the
    # f32 reference (errors are well below this for these depths/magnitudes).
    np.testing.assert_allclose(np.asarray(out), np.asarray(ref),
                               atol=5e-2, rtol=5e-2)
    print("KERNEL_OK")
</pallas_src>

<mosaic_0001>
module attributes {stable_mosaic.version = 11 : i64} {
  func.func @_conv1x1_kernel(%arg0: i32, %arg1: memref<1x16x32xf32, #tpu.memory_space<vmem>>, %arg2: memref<32x32xf32, #tpu.memory_space<vmem>>, %arg3: memref<1x32xf32, #tpu.memory_space<vmem>>, %arg4: memref<1x16x32xbf16, #tpu.memory_space<vmem>>) attributes {dimension_semantics = [#tpu.dimension_semantics<parallel>], iteration_bounds = array<i64: 2>, scalar_prefetch = 0 : i64, scratch_operands = 0 : i64, tpu.core_type = #tpu.core_type<tc>, window_params = [{transform_indices = @transform_0, window_bounds = array<i64: 1, 16, 32>}, {pipeline_mode = #tpu.pipeline_mode<synchronous>, transform_indices = @transform_1, window_bounds = array<i64: 32, 32>}, {pipeline_mode = #tpu.pipeline_mode<synchronous>, transform_indices = @transform_2, window_bounds = array<i64: 1, 32>}, {transform_indices = @transform_3, window_bounds = array<i64: 1, 16, 32>}]} {
    %c0 = arith.constant 0 : index
    %c0_0 = arith.constant 0 : index
    %c0_1 = arith.constant 0 : index
    %0 = vector.load %arg1[%c0, %c0_0, %c0_1] : memref<1x16x32xf32, #tpu.memory_space<vmem>>, vector<1x16x32xf32>
    %1 = vector.shape_cast %0 : vector<1x16x32xf32> to vector<16x32xf32>
    %2 = arith.truncf %1 : vector<16x32xf32> to vector<16x32xbf16>
    %c0_2 = arith.constant 0 : index
    %c0_3 = arith.constant 0 : index
    %3 = vector.load %arg2[%c0_2, %c0_3] : memref<32x32xf32, #tpu.memory_space<vmem>>, vector<32x32xf32>
    %4 = arith.truncf %3 : vector<32x32xf32> to vector<32x32xbf16>
    %cst = arith.constant dense<0.000000e+00> : vector<16x32xf32>
    %5 = tpu.matmul %2, %4, %cst {dimension_numbers = #tpu.dot_dimension_numbers<[1], [0], [0], [1], [0, 0, 1, 1], [], []>} : vector<16x32xbf16>, vector<32x32xbf16>, vector<16x32xf32> -> vector<16x32xf32>
    %c0_4 = arith.constant 0 : index
    %c0_5 = arith.constant 0 : index
    %6 = vector.load %arg3[%c0_4, %c0_5] : memref<1x32xf32, #tpu.memory_space<vmem>>, vector<1x32xf32>
    %7 = vector.broadcast %6 : vector<1x32xf32> to vector<16x32xf32>
    %8 = arith.addf %5, %7 : vector<16x32xf32>
    %9 = arith.truncf %8 : vector<16x32xf32> to vector<16x32xbf16>
    %c0_6 = arith.constant 0 : index
    %c0_7 = arith.constant 0 : index
    %c0_8 = arith.constant 0 : index
    %10 = vector.load %arg4[%c0_6, %c0_7, %c0_8] : memref<1x16x32xbf16, #tpu.memory_space<vmem>>, vector<1x16x32xbf16>
    %11 = vector.shape_cast %10 : vector<1x16x32xbf16> to vector<16x32xbf16>
    %12 = vector.shape_cast %9 : vector<16x32xbf16> to vector<1x16x32xbf16>
    tpu.vector_store %arg4[%c0_6, %c0_7, %c0_8], %12 {strides = array<i32>} : memref<1x16x32xbf16, #tpu.memory_space<vmem>>, vector<1x16x32xbf16>,
    return
  }
  func.func @transform_0(%arg0: i32) -> (i32, i32, i32) {
    %c0_i32 = arith.constant 0 : i32
    %c0_i32_0 = arith.constant 0 : i32
    %c0_i32_1 = arith.constant 0 : i32
    return %arg0, %c0_i32, %c0_i32_0 : i32, i32, i32
  }
  func.func @transform_1(%arg0: i32) -> (i32, i32) {
    %c0_i32 = arith.constant 0 : i32
    %c0_i32_0 = arith.constant 0 : i32
    %c0_i32_1 = arith.constant 0 : i32
    return %c0_i32, %c0_i32_0 : i32, i32
  }
  func.func @transform_2(%arg0: i32) -> (i32, i32) {
    %c0_i32 = arith.constant 0 : i32
    %c0_i32_0 = arith.constant 0 : i32
    %c0_i32_1 = arith.constant 0 : i32
    return %c0_i32, %c0_i32_0 : i32, i32
  }
  func.func @transform_3(%arg0: i32) -> (i32, i32, i32) {
    %c0_i32 = arith.constant 0 : i32
    %c0_i32_0 = arith.constant 0 : i32
    %c0_i32_1 = arith.constant 0 : i32
    return %arg0, %c0_i32, %c0_i32_0 : i32, i32, i32
  }
}

module attributes {stable_mosaic.version = 11 : i64} {
  func.func @_res_layer_kernel(%arg0: i32, %arg1: memref<1x18x32xbf16, #tpu.memory_space<vmem>>, %arg2: memref<3x32x32xf32, #tpu.memory_space<vmem>>, %arg3: memref<1x32xf32, #tpu.memory_space<vmem>>, %arg4: memref<32x32xf32, #tpu.memory_space<vmem>>, %arg5: memref<1x32xf32, #tpu.memory_space<vmem>>, %arg6: memref<1x16x32xbf16, #tpu.memory_space<vmem>>) attributes {dimension_semantics = [#tpu.dimension_semantics<parallel>], iteration_bounds = array<i64: 2>, scalar_prefetch = 0 : i64, scratch_operands = 0 : i64, tpu.core_type = #tpu.core_type<tc>, window_params = [{transform_indices = @transform_0, window_bounds = array<i64: 1, 18, 32>}, {pipeline_mode = #tpu.pipeline_mode<synchronous>, transform_indices = @transform_1, window_bounds = array<i64: 3, 32, 32>}, {pipeline_mode = #tpu.pipeline_mode<synchronous>, transform_indices = @transform_2, window_bounds = array<i64: 1, 32>}, {pipeline_mode = #tpu.pipeline_mode<synchronous>, transform_indices = @transform_3, window_bounds = array<i64: 32, 32>}, {pipeline_mode = #tpu.pipeline_mode<synchronous>, transform_indices = @transform_4, window_bounds = array<i64: 1, 32>}, {transform_indices = @transform_5, window_bounds = array<i64: 1, 16, 32>}]} {
    %c0 = arith.constant 0 : index
    %c0_0 = arith.constant 0 : index
    %c0_1 = arith.constant 0 : index
    %0 = vector.load %arg1[%c0, %c0_0, %c0_1] : memref<1x18x32xbf16, #tpu.memory_space<vmem>>, vector<1x18x32xbf16>
    %1 = vector.shape_cast %0 : vector<1x18x32xbf16> to vector<18x32xbf16>
    %2 = arith.extf %1 : vector<18x32xbf16> to vector<18x32xf32>
    %3 = vector.extract_strided_slice %2 {offsets = [0, 0], sizes = [16, 32], strides = [1, 1]} : vector<18x32xf32> to vector<16x32xf32>
    %4 = arith.truncf %3 : vector<16x32xf32> to vector<16x32xbf16>
    %c0_2 = arith.constant 0 : index
    %c0_3 = arith.constant 0 : index
    %c0_4 = arith.constant 0 : index
    %5 = vector.load %arg2[%c0_2, %c0_3, %c0_4] : memref<3x32x32xf32, #tpu.memory_space<vmem>>, vector<1x32x32xf32>
    %6 = vector.shape_cast %5 : vector<1x32x32xf32> to vector<32x32xf32>
    %7 = arith.truncf %6 : vector<32x32xf32> to vector<32x32xbf16>
    %cst = arith.constant dense<0.000000e+00> : vector<16x32xf32>
    %8 = tpu.matmul %4, %7, %cst {dimension_numbers = #tpu.dot_dimension_numbers<[1], [0], [0], [1], [0, 0, 1, 1], [], []>} : vector<16x32xbf16>, vector<32x32xbf16>, vector<16x32xf32> -> vector<16x32xf32>
    %9 = vector.extract_strided_slice %2 {offsets = [1, 0], sizes = [16, 32], strides = [1, 1]} : vector<18x32xf32> to vector<16x32xf32>
    %10 = arith.truncf %9 : vector<16x32xf32> to vector<16x32xbf16>
    %c1 = arith.constant 1 : index
    %c0_5 = arith.constant 0 : index
    %c0_6 = arith.constant 0 : index
    %11 = vector.load %arg2[%c1, %c0_5, %c0_6] : memref<3x32x32xf32, #tpu.memory_space<vmem>>, vector<1x32x32xf32>
    %12 = vector.shape_cast %11 : vector<1x32x32xf32> to vector<32x32xf32>
    %13 = arith.truncf %12 : vector<32x32xf32> to vector<32x32xbf16>
    %cst_7 = arith.constant dense<0.000000e+00> : vector<16x32xf32>
    %14 = tpu.matmul %10, %13, %cst_7 {dimension_numbers = #tpu.dot_dimension_numbers<[1], [0], [0], [1], [0, 0, 1, 1], [], []>} : vector<16x32xbf16>, vector<32x32xbf16>, vector<16x32xf32> -> vector<16x32xf32>
    %15 = arith.addf %8, %14 : vector<16x32xf32>
    %16 = vector.extract_strided_slice %2 {offsets = [2, 0], sizes = [16, 32], strides = [1, 1]} : vector<18x32xf32> to vector<16x32xf32>
    %17 = arith.truncf %16 : vector<16x32xf32> to vector<16x32xbf16>
    %c2 = arith.constant 2 : index
    %c0_8 = arith.constant 0 : index
    %c0_9 = arith.constant 0 : index
    %18 = vector.load %arg2[%c2, %c0_8, %c0_9] : memref<3x32x32xf32, #tpu.memory_space<vmem>>, vector<1x32x32xf32>
    %19 = vector.shape_cast %18 : vector<1x32x32xf32> to vector<32x32xf32>
    %20 = arith.truncf %19 : vector<32x32xf32> to vector<32x32xbf16>
    %cst_10 = arith.constant dense<0.000000e+00> : vector<16x32xf32>
    %21 = tpu.matmul %17, %20, %cst_10 {dimension_numbers = #tpu.dot_dimension_numbers<[1], [0], [0], [1], [0, 0, 1, 1], [], []>} : vector<16x32xbf16>, vector<32x32xbf16>, vector<16x32xf32> -> vector<16x32xf32>
    %22 = arith.addf %15, %21 : vector<16x32xf32>
    %c0_11 = arith.constant 0 : index
    %c0_12 = arith.constant 0 : index
    %23 = vector.load %arg3[%c0_11, %c0_12] : memref<1x32xf32, #tpu.memory_space<vmem>>, vector<1x32xf32>
    %24 = vector.broadcast %23 : vector<1x32xf32> to vector<16x32xf32>
    %25 = arith.addf %22, %24 : vector<16x32xf32>
    %cst_13 = arith.constant 0.000000e+00 : f32
    %26 = vector.broadcast %cst_13 : f32 to vector<16x32xf32>
    %27 = arith.maximumf %25, %26 : vector<16x32xf32>
    %28 = arith.truncf %27 : vector<16x32xf32> to vector<16x32xbf16>
    %c0_14 = arith.constant 0 : index
    %c0_15 = arith.constant 0 : index
    %29 = vector.load %arg4[%c0_14, %c0_15] : memref<32x32xf32, #tpu.memory_space<vmem>>, vector<32x32xf32>
    %30 = arith.truncf %29 : vector<32x32xf32> to vector<32x32xbf16>
    %cst_16 = arith.constant dense<0.000000e+00> : vector<16x32xf32>
    %31 = tpu.matmul %28, %30, %cst_16 {dimension_numbers = #tpu.dot_dimension_numbers<[1], [0], [0], [1], [0, 0, 1, 1], [], []>} : vector<16x32xbf16>, vector<32x32xbf16>, vector<16x32xf32> -> vector<16x32xf32>
    %c0_17 = arith.constant 0 : index
    %c0_18 = arith.constant 0 : index
    %32 = vector.load %arg5[%c0_17, %c0_18] : memref<1x32xf32, #tpu.memory_space<vmem>>, vector<1x32xf32>
    %33 = vector.broadcast %32 : vector<1x32xf32> to vector<16x32xf32>
    %34 = arith.addf %31, %33 : vector<16x32xf32>
    %35 = vector.extract_strided_slice %2 {offsets = [1, 0], sizes = [16, 32], strides = [1, 1]} : vector<18x32xf32> to vector<16x32xf32>
    %36 = arith.addf %34, %35 : vector<16x32xf32>
    %37 = arith.truncf %36 : vector<16x32xf32> to vector<16x32xbf16>
    %c0_19 = arith.constant 0 : index
    %c0_20 = arith.constant 0 : index
    %c0_21 = arith.constant 0 : index
    %38 = vector.load %arg6[%c0_19, %c0_20, %c0_21] : memref<1x16x32xbf16, #tpu.memory_space<vmem>>, vector<1x16x32xbf16>
    %39 = vector.shape_cast %38 : vector<1x16x32xbf16> to vector<16x32xbf16>
    %40 = vector.shape_cast %37 : vector<16x32xbf16> to vector<1x16x32xbf16>
    tpu.vector_store %arg6[%c0_19, %c0_20, %c0_21], %40 {strides = array<i32>} : memref<1x16x32xbf16, #tpu.memory_space<vmem>>, vector<1x16x32xbf16>,
    return
  }
  func.func @transform_0(%arg0: i32) -> (i32, i32, i32) {
    %c0_i32 = arith.constant 0 : i32
    %c0_i32_0 = arith.constant 0 : i32
    %c0_i32_1 = arith.constant 0 : i32
    return %arg0, %c0_i32, %c0_i32_0 : i32, i32, i32
  }
  func.func @transform_1(%arg0: i32) -> (i32, i32, i32) {
    %c0_i32 = arith.constant 0 : i32
    %c0_i32_0 = arith.constant 0 : i32
    %c0_i32_1 = arith.constant 0 : i32
    %c0_i32_2 = arith.constant 0 : i32
    return %c0_i32, %c0_i32_0, %c0_i32_1 : i32, i32, i32
  }
  func.func @transform_2(%arg0: i32) -> (i32, i32) {
    %c0_i32 = arith.constant 0 : i32
    %c0_i32_0 = arith.constant 0 : i32
    %c0_i32_1 = arith.constant 0 : i32
    return %c0_i32, %c0_i32_0 : i32, i32
  }
  func.func @transform_3(%arg0: i32) -> (i32, i32) {
    %c0_i32 = arith.constant 0 : i32
    %c0_i32_0 = arith.constant 0 : i32
    %c0_i32_1 = arith.constant 0 : i32
    return %c0_i32, %c0_i32_0 : i32, i32
  }
  func.func @transform_4(%arg0: i32) -> (i32, i32) {
    %c0_i32 = arith.constant 0 : i32
    %c0_i32_0 = arith.constant 0 : i32
    %c0_i32_1 = arith.constant 0 : i32
    return %c0_i32, %c0_i32_0 : i32, i32
  }
  func.func @transform_5(%arg0: i32) -> (i32, i32, i32) {
    %c0_i32 = arith.constant 0 : i32
    %c0_i32_0 = arith.constant 0 : i32
    %c0_i32_1 = arith.constant 0 : i32
    return %arg0, %c0_i32, %c0_i32_0 : i32, i32, i32
  }
}

module attributes {stable_mosaic.version = 11 : i64} {
  func.func @_res_layer_kernel(%arg0: i32, %arg1: memref<1x20x32xbf16, #tpu.memory_space<vmem>>, %arg2: memref<3x32x32xf32, #tpu.memory_space<vmem>>, %arg3: memref<1x32xf32, #tpu.memory_space<vmem>>, %arg4: memref<32x32xf32, #tpu.memory_space<vmem>>, %arg5: memref<1x32xf32, #tpu.memory_space<vmem>>, %arg6: memref<1x16x32xbf16, #tpu.memory_space<vmem>>) attributes {dimension_semantics = [#tpu.dimension_semantics<parallel>], iteration_bounds = array<i64: 2>, scalar_prefetch = 0 : i64, scratch_operands = 0 : i64, tpu.core_type = #tpu.core_type<tc>, window_params = [{transform_indices = @transform_0, window_bounds = array<i64: 1, 20, 32>}, {pipeline_mode = #tpu.pipeline_mode<synchronous>, transform_indices = @transform_1, window_bounds = array<i64: 3, 32, 32>}, {pipeline_mode = #tpu.pipeline_mode<synchronous>, transform_indices = @transform_2, window_bounds = array<i64: 1, 32>}, {pipeline_mode = #tpu.pipeline_mode<synchronous>, transform_indices = @transform_3, window_bounds = array<i64: 32, 32>}, {pipeline_mode = #tpu.pipeline_mode<synchronous>, transform_indices = @transform_4, window_bounds = array<i64: 1, 32>}, {transform_indices = @transform_5, window_bounds = array<i64: 1, 16, 32>}]} {
    %c0 = arith.constant 0 : index
    %c0_0 = arith.constant 0 : index
    %c0_1 = arith.constant 0 : index
    %0 = vector.load %arg1[%c0, %c0_0, %c0_1] : memref<1x20x32xbf16, #tpu.memory_space<vmem>>, vector<1x20x32xbf16>
    %1 = vector.shape_cast %0 : vector<1x20x32xbf16> to vector<20x32xbf16>
    %2 = arith.extf %1 : vector<20x32xbf16> to vector<20x32xf32>
    %3 = vector.extract_strided_slice %2 {offsets = [0, 0], sizes = [16, 32], strides = [1, 1]} : vector<20x32xf32> to vector<16x32xf32>
    %4 = arith.truncf %3 : vector<16x32xf32> to vector<16x32xbf16>
    %c0_2 = arith.constant 0 : index
    %c0_3 = arith.constant 0 : index
    %c0_4 = arith.constant 0 : index
    %5 = vector.load %arg2[%c0_2, %c0_3, %c0_4] : memref<3x32x32xf32, #tpu.memory_space<vmem>>, vector<1x32x32xf32>
    %6 = vector.shape_cast %5 : vector<1x32x32xf32> to vector<32x32xf32>
    %7 = arith.truncf %6 : vector<32x32xf32> to vector<32x32xbf16>
    %cst = arith.constant dense<0.000000e+00> : vector<16x32xf32>
    %8 = tpu.matmul %4, %7, %cst {dimension_numbers = #tpu.dot_dimension_numbers<[1], [0], [0], [1], [0, 0, 1, 1], [], []>} : vector<16x32xbf16>, vector<32x32xbf16>, vector<16x32xf32> -> vector<16x32xf32>
    %9 = vector.extract_strided_slice %2 {offsets = [2, 0], sizes = [16, 32], strides = [1, 1]} : vector<20x32xf32> to vector<16x32xf32>
    %10 = arith.truncf %9 : vector<16x32xf32> to vector<16x32xbf16>
    %c1 = arith.constant 1 : index
    %c0_5 = arith.constant 0 : index
    %c0_6 = arith.constant 0 : index
    %11 = vector.load %arg2[%c1, %c0_5, %c0_6] : memref<3x32x32xf32, #tpu.memory_space<vmem>>, vector<1x32x32xf32>
    %12 = vector.shape_cast %11 : vector<1x32x32xf32> to vector<32x32xf32>
    %13 = arith.truncf %12 : vector<32x32xf32> to vector<32x32xbf16>
    %cst_7 = arith.constant dense<0.000000e+00> : vector<16x32xf32>
    %14 = tpu.matmul %10, %13, %cst_7 {dimension_numbers = #tpu.dot_dimension_numbers<[1], [0], [0], [1], [0, 0, 1, 1], [], []>} : vector<16x32xbf16>, vector<32x32xbf16>, vector<16x32xf32> -> vector<16x32xf32>
    %15 = arith.addf %8, %14 : vector<16x32xf32>
    %16 = vector.extract_strided_slice %2 {offsets = [4, 0], sizes = [16, 32], strides = [1, 1]} : vector<20x32xf32> to vector<16x32xf32>
    %17 = arith.truncf %16 : vector<16x32xf32> to vector<16x32xbf16>
    %c2 = arith.constant 2 : index
    %c0_8 = arith.constant 0 : index
    %c0_9 = arith.constant 0 : index
    %18 = vector.load %arg2[%c2, %c0_8, %c0_9] : memref<3x32x32xf32, #tpu.memory_space<vmem>>, vector<1x32x32xf32>
    %19 = vector.shape_cast %18 : vector<1x32x32xf32> to vector<32x32xf32>
    %20 = arith.truncf %19 : vector<32x32xf32> to vector<32x32xbf16>
    %cst_10 = arith.constant dense<0.000000e+00> : vector<16x32xf32>
    %21 = tpu.matmul %17, %20, %cst_10 {dimension_numbers = #tpu.dot_dimension_numbers<[1], [0], [0], [1], [0, 0, 1, 1], [], []>} : vector<16x32xbf16>, vector<32x32xbf16>, vector<16x32xf32> -> vector<16x32xf32>
    %22 = arith.addf %15, %21 : vector<16x32xf32>
    %c0_11 = arith.constant 0 : index
    %c0_12 = arith.constant 0 : index
    %23 = vector.load %arg3[%c0_11, %c0_12] : memref<1x32xf32, #tpu.memory_space<vmem>>, vector<1x32xf32>
    %24 = vector.broadcast %23 : vector<1x32xf32> to vector<16x32xf32>
    %25 = arith.addf %22, %24 : vector<16x32xf32>
    %cst_13 = arith.constant 0.000000e+00 : f32
    %26 = vector.broadcast %cst_13 : f32 to vector<16x32xf32>
    %27 = arith.maximumf %25, %26 : vector<16x32xf32>
    %28 = arith.truncf %27 : vector<16x32xf32> to vector<16x32xbf16>
    %c0_14 = arith.constant 0 : index
    %c0_15 = arith.constant 0 : index
    %29 = vector.load %arg4[%c0_14, %c0_15] : memref<32x32xf32, #tpu.memory_space<vmem>>, vector<32x32xf32>
    %30 = arith.truncf %29 : vector<32x32xf32> to vector<32x32xbf16>
    %cst_16 = arith.constant dense<0.000000e+00> : vector<16x32xf32>
    %31 = tpu.matmul %28, %30, %cst_16 {dimension_numbers = #tpu.dot_dimension_numbers<[1], [0], [0], [1], [0, 0, 1, 1], [], []>} : vector<16x32xbf16>, vector<32x32xbf16>, vector<16x32xf32> -> vector<16x32xf32>
    %c0_17 = arith.constant 0 : index
    %c0_18 = arith.constant 0 : index
    %32 = vector.load %arg5[%c0_17, %c0_18] : memref<1x32xf32, #tpu.memory_space<vmem>>, vector<1x32xf32>
    %33 = vector.broadcast %32 : vector<1x32xf32> to vector<16x32xf32>
    %34 = arith.addf %31, %33 : vector<16x32xf32>
    %35 = vector.extract_strided_slice %2 {offsets = [2, 0], sizes = [16, 32], strides = [1, 1]} : vector<20x32xf32> to vector<16x32xf32>
    %36 = arith.addf %34, %35 : vector<16x32xf32>
    %37 = arith.truncf %36 : vector<16x32xf32> to vector<16x32xbf16>
    %c0_19 = arith.constant 0 : index
    %c0_20 = arith.constant 0 : index
    %c0_21 = arith.constant 0 : index
    %38 = vector.load %arg6[%c0_19, %c0_20, %c0_21] : memref<1x16x32xbf16, #tpu.memory_space<vmem>>, vector<1x16x32xbf16>
    %39 = vector.shape_cast %38 : vector<1x16x32xbf16> to vector<16x32xbf16>
    %40 = vector.shape_cast %37 : vector<16x32xbf16> to vector<1x16x32xbf16>
    tpu.vector_store %arg6[%c0_19, %c0_20, %c0_21], %40 {strides = array<i32>} : memref<1x16x32xbf16, #tpu.memory_space<vmem>>, vector<1x16x32xbf16>,
    return
  }
  func.func @transform_0(%arg0: i32) -> (i32, i32, i32) {
    %c0_i32 = arith.constant 0 : i32
    %c0_i32_0 = arith.constant 0 : i32
    %c0_i32_1 = arith.constant 0 : i32
    return %arg0, %c0_i32, %c0_i32_0 : i32, i32, i32
  }
  func.func @transform_1(%arg0: i32) -> (i32, i32, i32) {
    %c0_i32 = arith.constant 0 : i32
    %c0_i32_0 = arith.constant 0 : i32
    %c0_i32_1 = arith.constant 0 : i32
    %c0_i32_2 = arith.constant 0 : i32
    return %c0_i32, %c0_i32_0, %c0_i32_1 : i32, i32, i32
  }
  func.func @transform_2(%arg0: i32) -> (i32, i32) {
    %c0_i32 = arith.constant 0 : i32
    %c0_i32_0 = arith.constant 0 : i32
    %c0_i32_1 = arith.constant 0 : i32
    return %c0_i32, %c0_i32_0 : i32, i32
  }
  func.func @transform_3(%arg0: i32) -> (i32, i32) {
    %c0_i32 = arith.constant 0 : i32
    %c0_i32_0 = arith.constant 0 : i32
    %c0_i32_1 = arith.constant 0 : i32
    return %c0_i32, %c0_i32_0 : i32, i32
  }
  func.func @transform_4(%arg0: i32) -> (i32, i32) {
    %c0_i32 = arith.constant 0 : i32
    %c0_i32_0 = arith.constant 0 : i32
    %c0_i32_1 = arith.constant 0 : i32
    return %c0_i32, %c0_i32_0 : i32, i32
  }
  func.func @transform_5(%arg0: i32) -> (i32, i32, i32) {
    %c0_i32 = arith.constant 0 : i32
    %c0_i32_0 = arith.constant 0 : i32
    %c0_i32_1 = arith.constant 0 : i32
    return %arg0, %c0_i32, %c0_i32_0 : i32, i32, i32
  }
}

module attributes {stable_mosaic.version = 11 : i64} {
  func.func @_conv_out_kernel(%arg0: i32, %arg1: memref<1x9x32xbf16, #tpu.memory_space<vmem>>, %arg2: memref<1x9x32xbf16, #tpu.memory_space<vmem>>, %arg3: memref<3x32x8xf32, #tpu.memory_space<vmem>>, %arg4: memref<1x8xf32, #tpu.memory_space<vmem>>, %arg5: memref<1x8x8xbf16, #tpu.memory_space<vmem>>) attributes {dimension_semantics = [#tpu.dimension_semantics<parallel>], iteration_bounds = array<i64: 2>, scalar_prefetch = 0 : i64, scratch_operands = 0 : i64, tpu.core_type = #tpu.core_type<tc>, window_params = [{transform_indices = @transform_0, window_bounds = array<i64: 1, 9, 32>}, {transform_indices = @transform_1, window_bounds = array<i64: 1, 9, 32>}, {pipeline_mode = #tpu.pipeline_mode<synchronous>, transform_indices = @transform_2, window_bounds = array<i64: 3, 32, 8>}, {pipeline_mode = #tpu.pipeline_mode<synchronous>, transform_indices = @transform_3, window_bounds = array<i64: 1, 8>}, {transform_indices = @transform_4, window_bounds = array<i64: 1, 8, 8>}]} {
    %c0 = arith.constant 0 : index
    %c0_0 = arith.constant 0 : index
    %c0_1 = arith.constant 0 : index
    %0 = vector.load %arg1[%c0, %c0_0, %c0_1] : memref<1x9x32xbf16, #tpu.memory_space<vmem>>, vector<1x9x32xbf16>
    %1 = vector.shape_cast %0 : vector<1x9x32xbf16> to vector<9x32xbf16>
    %2 = arith.extf %1 : vector<9x32xbf16> to vector<9x32xf32>
    %c0_2 = arith.constant 0 : index
    %c0_3 = arith.constant 0 : index
    %c0_4 = arith.constant 0 : index
    %3 = vector.load %arg2[%c0_2, %c0_3, %c0_4] : memref<1x9x32xbf16, #tpu.memory_space<vmem>>, vector<1x9x32xbf16>
    %4 = vector.shape_cast %3 : vector<1x9x32xbf16> to vector<9x32xbf16>
    %5 = arith.extf %4 : vector<9x32xbf16> to vector<9x32xf32>
    %6 = vector.extract_strided_slice %2 {offsets = [0, 0], sizes = [8, 32], strides = [1, 1]} : vector<9x32xf32> to vector<8x32xf32>
    %7 = arith.truncf %6 : vector<8x32xf32> to vector<8x32xbf16>
    %c0_5 = arith.constant 0 : index
    %c0_6 = arith.constant 0 : index
    %c0_7 = arith.constant 0 : index
    %8 = vector.load %arg3[%c0_5, %c0_6, %c0_7] : memref<3x32x8xf32, #tpu.memory_space<vmem>>, vector<1x32x8xf32>
    %9 = vector.shape_cast %8 : vector<1x32x8xf32> to vector<32x8xf32>
    %10 = arith.truncf %9 : vector<32x8xf32> to vector<32x8xbf16>
    %cst = arith.constant dense<0.000000e+00> : vector<8x8xf32>
    %11 = tpu.matmul %7, %10, %cst {dimension_numbers = #tpu.dot_dimension_numbers<[1], [0], [0], [1], [0, 0, 1, 1], [], []>} : vector<8x32xbf16>, vector<32x8xbf16>, vector<8x8xf32> -> vector<8x8xf32>
    %12 = vector.extract_strided_slice %5 {offsets = [0, 0], sizes = [8, 32], strides = [1, 1]} : vector<9x32xf32> to vector<8x32xf32>
    %13 = arith.truncf %12 : vector<8x32xf32> to vector<8x32xbf16>
    %c1 = arith.constant 1 : index
    %c0_8 = arith.constant 0 : index
    %c0_9 = arith.constant 0 : index
    %14 = vector.load %arg3[%c1, %c0_8, %c0_9] : memref<3x32x8xf32, #tpu.memory_space<vmem>>, vector<1x32x8xf32>
    %15 = vector.shape_cast %14 : vector<1x32x8xf32> to vector<32x8xf32>
    %16 = arith.truncf %15 : vector<32x8xf32> to vector<32x8xbf16>
    %cst_10 = arith.constant dense<0.000000e+00> : vector<8x8xf32>
    %17 = tpu.matmul %13, %16, %cst_10 {dimension_numbers = #tpu.dot_dimension_numbers<[1], [0], [0], [1], [0, 0, 1, 1], [], []>} : vector<8x32xbf16>, vector<32x8xbf16>, vector<8x8xf32> -> vector<8x8xf32>
    %18 = arith.addf %11, %17 : vector<8x8xf32>
    %19 = vector.extract_strided_slice %2 {offsets = [1, 0], sizes = [8, 32], strides = [1, 1]} : vector<9x32xf32> to vector<8x32xf32>
    %20 = arith.truncf %19 : vector<8x32xf32> to vector<8x32xbf16>
    %c2 = arith.constant 2 : index
    %c0_11 = arith.constant 0 : index
    %c0_12 = arith.constant 0 : index
    %21 = vector.load %arg3[%c2, %c0_11, %c0_12] : memref<3x32x8xf32, #tpu.memory_space<vmem>>, vector<1x32x8xf32>
    %22 = vector.shape_cast %21 : vector<1x32x8xf32> to vector<32x8xf32>
    %23 = arith.truncf %22 : vector<32x8xf32> to vector<32x8xbf16>
    %cst_13 = arith.constant dense<0.000000e+00> : vector<8x8xf32>
    %24 = tpu.matmul %20, %23, %cst_13 {dimension_numbers = #tpu.dot_dimension_numbers<[1], [0], [0], [1], [0, 0, 1, 1], [], []>} : vector<8x32xbf16>, vector<32x8xbf16>, vector<8x8xf32> -> vector<8x8xf32>
    %25 = arith.addf %18, %24 : vector<8x8xf32>
    %c0_14 = arith.constant 0 : index
    %c0_15 = arith.constant 0 : index
    %26 = vector.load %arg4[%c0_14, %c0_15] : memref<1x8xf32, #tpu.memory_space<vmem>>, vector<1x8xf32>
    %27 = vector.broadcast %26 : vector<1x8xf32> to vector<8x8xf32>
    %28 = arith.addf %25, %27 : vector<8x8xf32>
    %cst_16 = arith.constant 0.000000e+00 : f32
    %29 = vector.broadcast %cst_16 : f32 to vector<8x8xf32>
    %30 = arith.maximumf %28, %29 : vector<8x8xf32>
    %31 = arith.truncf %30 : vector<8x8xf32> to vector<8x8xbf16>
    %c0_17 = arith.constant 0 : index
    %c0_18 = arith.constant 0 : index
    %c0_19 = arith.constant 0 : index
    %32 = vector.load %arg5[%c0_17, %c0_18, %c0_19] : memref<1x8x8xbf16, #tpu.memory_space<vmem>>, vector<1x8x8xbf16>
    %33 = vector.shape_cast %32 : vector<1x8x8xbf16> to vector<8x8xbf16>
    %34 = vector.shape_cast %31 : vector<8x8xbf16> to vector<1x8x8xbf16>
    tpu.vector_store %arg5[%c0_17, %c0_18, %c0_19], %34 {strides = array<i32>} : memref<1x8x8xbf16, #tpu.memory_space<vmem>>, vector<1x8x8xbf16>,
    return
  }
  func.func @transform_0(%arg0: i32) -> (i32, i32, i32) {
    %c0_i32 = arith.constant 0 : i32
    %c0_i32_0 = arith.constant 0 : i32
    %c0_i32_1 = arith.constant 0 : i32
    return %arg0, %c0_i32, %c0_i32_0 : i32, i32, i32
  }
  func.func @transform_1(%arg0: i32) -> (i32, i32, i32) {
    %c0_i32 = arith.constant 0 : i32
    %c0_i32_0 = arith.constant 0 : i32
    %c0_i32_1 = arith.constant 0 : i32
    return %arg0, %c0_i32, %c0_i32_0 : i32, i32, i32
  }
  func.func @transform_2(%arg0: i32) -> (i32, i32, i32) {
    %c0_i32 = arith.constant 0 : i32
    %c0_i32_0 = arith.constant 0 : i32
    %c0_i32_1 = arith.constant 0 : i32
    %c0_i32_2 = arith.constant 0 : i32
    return %c0_i32, %c0_i32_0, %c0_i32_1 : i32, i32, i32
  }
  func.func @transform_3(%arg0: i32) -> (i32, i32) {
    %c0_i32 = arith.constant 0 : i32
    %c0_i32_0 = arith.constant 0 : i32
    %c0_i32_1 = arith.constant 0 : i32
    return %c0_i32, %c0_i32_0 : i32, i32
  }
  func.func @transform_4(%arg0: i32) -> (i32, i32, i32) {
    %c0_i32 = arith.constant 0 : i32
    %c0_i32_0 = arith.constant 0 : i32
    %c0_i32_1 = arith.constant 0 : i32
    return %arg0, %c0_i32, %c0_i32_0 : i32, i32, i32
  }
}

module attributes {stable_mosaic.version = 11 : i64} {
  func.func @_conv1x1_kernel(%arg0: i32, %arg1: memref<1x8x8xbf16, #tpu.memory_space<vmem>>, %arg2: memref<8x32xf32, #tpu.memory_space<vmem>>, %arg3: memref<1x32xf32, #tpu.memory_space<vmem>>, %arg4: memref<1x8x32xbf16, #tpu.memory_space<vmem>>) attributes {dimension_semantics = [#tpu.dimension_semantics<parallel>], iteration_bounds = array<i64: 2>, scalar_prefetch = 0 : i64, scratch_operands = 0 : i64, tpu.core_type = #tpu.core_type<tc>, window_params = [{transform_indices = @transform_0, window_bounds = array<i64: 1, 8, 8>}, {pipeline_mode = #tpu.pipeline_mode<synchronous>, transform_indices = @transform_1, window_bounds = array<i64: 8, 32>}, {pipeline_mode = #tpu.pipeline_mode<synchronous>, transform_indices = @transform_2, window_bounds = array<i64: 1, 32>}, {transform_indices = @transform_3, window_bounds = array<i64: 1, 8, 32>}]} {
    %c0 = arith.constant 0 : index
    %c0_0 = arith.constant 0 : index
    %c0_1 = arith.constant 0 : index
    %0 = vector.load %arg1[%c0, %c0_0, %c0_1] : memref<1x8x8xbf16, #tpu.memory_space<vmem>>, vector<1x8x8xbf16>
    %1 = vector.shape_cast %0 : vector<1x8x8xbf16> to vector<8x8xbf16>
    %c0_2 = arith.constant 0 : index
    %c0_3 = arith.constant 0 : index
    %2 = vector.load %arg2[%c0_2, %c0_3] : memref<8x32xf32, #tpu.memory_space<vmem>>, vector<8x32xf32>
    %3 = arith.truncf %2 : vector<8x32xf32> to vector<8x32xbf16>
    %cst = arith.constant dense<0.000000e+00> : vector<8x32xf32>
    %4 = tpu.matmul %1, %3, %cst {dimension_numbers = #tpu.dot_dimension_numbers<[1], [0], [0], [1], [0, 0, 1, 1], [], []>} : vector<8x8xbf16>, vector<8x32xbf16>, vector<8x32xf32> -> vector<8x32xf32>
    %c0_4 = arith.constant 0 : index
    %c0_5 = arith.constant 0 : index
    %5 = vector.load %arg3[%c0_4, %c0_5] : memref<1x32xf32, #tpu.memory_space<vmem>>, vector<1x32xf32>
    %6 = vector.broadcast %5 : vector<1x32xf32> to vector<8x32xf32>
    %7 = arith.addf %4, %6 : vector<8x32xf32>
    %8 = arith.truncf %7 : vector<8x32xf32> to vector<8x32xbf16>
    %c0_6 = arith.constant 0 : index
    %c0_7 = arith.constant 0 : index
    %c0_8 = arith.constant 0 : index
    %9 = vector.load %arg4[%c0_6, %c0_7, %c0_8] : memref<1x8x32xbf16, #tpu.memory_space<vmem>>, vector<1x8x32xbf16>
    %10 = vector.shape_cast %9 : vector<1x8x32xbf16> to vector<8x32xbf16>
    %11 = vector.shape_cast %8 : vector<8x32xbf16> to vector<1x8x32xbf16>
    tpu.vector_store %arg4[%c0_6, %c0_7, %c0_8], %11 {strides = array<i32>} : memref<1x8x32xbf16, #tpu.memory_space<vmem>>, vector<1x8x32xbf16>,
    return
  }
  func.func @transform_0(%arg0: i32) -> (i32, i32, i32) {
    %c0_i32 = arith.constant 0 : i32
    %c0_i32_0 = arith.constant 0 : i32
    %c0_i32_1 = arith.constant 0 : i32
    return %arg0, %c0_i32, %c0_i32_0 : i32, i32, i32
  }
  func.func @transform_1(%arg0: i32) -> (i32, i32) {
    %c0_i32 = arith.constant 0 : i32
    %c0_i32_0 = arith.constant 0 : i32
    %c0_i32_1 = arith.constant 0 : i32
    return %c0_i32, %c0_i32_0 : i32, i32
  }
  func.func @transform_2(%arg0: i32) -> (i32, i32) {
    %c0_i32 = arith.constant 0 : i32
    %c0_i32_0 = arith.constant 0 : i32
    %c0_i32_1 = arith.constant 0 : i32
    return %c0_i32, %c0_i32_0 : i32, i32
  }
  func.func @transform_3(%arg0: i32) -> (i32, i32, i32) {
    %c0_i32 = arith.constant 0 : i32
    %c0_i32_0 = arith.constant 0 : i32
    %c0_i32_1 = arith.constant 0 : i32
    return %arg0, %c0_i32, %c0_i32_0 : i32, i32, i32
  }
}

module attributes {stable_mosaic.version = 11 : i64} {
  func.func @_res_layer_kernel(%arg0: i32, %arg1: memref<1x10x32xbf16, #tpu.memory_space<vmem>>, %arg2: memref<3x32x32xf32, #tpu.memory_space<vmem>>, %arg3: memref<1x32xf32, #tpu.memory_space<vmem>>, %arg4: memref<32x32xf32, #tpu.memory_space<vmem>>, %arg5: memref<1x32xf32, #tpu.memory_space<vmem>>, %arg6: memref<1x8x32xbf16, #tpu.memory_space<vmem>>) attributes {dimension_semantics = [#tpu.dimension_semantics<parallel>], iteration_bounds = array<i64: 2>, scalar_prefetch = 0 : i64, scratch_operands = 0 : i64, tpu.core_type = #tpu.core_type<tc>, window_params = [{transform_indices = @transform_0, window_bounds = array<i64: 1, 10, 32>}, {pipeline_mode = #tpu.pipeline_mode<synchronous>, transform_indices = @transform_1, window_bounds = array<i64: 3, 32, 32>}, {pipeline_mode = #tpu.pipeline_mode<synchronous>, transform_indices = @transform_2, window_bounds = array<i64: 1, 32>}, {pipeline_mode = #tpu.pipeline_mode<synchronous>, transform_indices = @transform_3, window_bounds = array<i64: 32, 32>}, {pipeline_mode = #tpu.pipeline_mode<synchronous>, transform_indices = @transform_4, window_bounds = array<i64: 1, 32>}, {transform_indices = @transform_5, window_bounds = array<i64: 1, 8, 32>}]} {
    %c0 = arith.constant 0 : index
    %c0_0 = arith.constant 0 : index
    %c0_1 = arith.constant 0 : index
    %0 = vector.load %arg1[%c0, %c0_0, %c0_1] : memref<1x10x32xbf16, #tpu.memory_space<vmem>>, vector<1x10x32xbf16>
    %1 = vector.shape_cast %0 : vector<1x10x32xbf16> to vector<10x32xbf16>
    %2 = arith.extf %1 : vector<10x32xbf16> to vector<10x32xf32>
    %3 = vector.extract_strided_slice %2 {offsets = [0, 0], sizes = [8, 32], strides = [1, 1]} : vector<10x32xf32> to vector<8x32xf32>
    %4 = arith.truncf %3 : vector<8x32xf32> to vector<8x32xbf16>
    %c0_2 = arith.constant 0 : index
    %c0_3 = arith.constant 0 : index
    %c0_4 = arith.constant 0 : index
    %5 = vector.load %arg2[%c0_2, %c0_3, %c0_4] : memref<3x32x32xf32, #tpu.memory_space<vmem>>, vector<1x32x32xf32>
    %6 = vector.shape_cast %5 : vector<1x32x32xf32> to vector<32x32xf32>
    %7 = arith.truncf %6 : vector<32x32xf32> to vector<32x32xbf16>
    %cst = arith.constant dense<0.000000e+00> : vector<8x32xf32>
    %8 = tpu.matmul %4, %7, %cst {dimension_numbers = #tpu.dot_dimension_numbers<[1], [0], [0], [1], [0, 0, 1, 1], [], []>} : vector<8x32xbf16>, vector<32x32xbf16>, vector<8x32xf32> -> vector<8x32xf32>
    %9 = vector.extract_strided_slice %2 {offsets = [1, 0], sizes = [8, 32], strides = [1, 1]} : vector<10x32xf32> to vector<8x32xf32>
    %10 = arith.truncf %9 : vector<8x32xf32> to vector<8x32xbf16>
    %c1 = arith.constant 1 : index
    %c0_5 = arith.constant 0 : index
    %c0_6 = arith.constant 0 : index
    %11 = vector.load %arg2[%c1, %c0_5, %c0_6] : memref<3x32x32xf32, #tpu.memory_space<vmem>>, vector<1x32x32xf32>
    %12 = vector.shape_cast %11 : vector<1x32x32xf32> to vector<32x32xf32>
    %13 = arith.truncf %12 : vector<32x32xf32> to vector<32x32xbf16>
    %cst_7 = arith.constant dense<0.000000e+00> : vector<8x32xf32>
    %14 = tpu.matmul %10, %13, %cst_7 {dimension_numbers = #tpu.dot_dimension_numbers<[1], [0], [0], [1], [0, 0, 1, 1], [], []>} : vector<8x32xbf16>, vector<32x32xbf16>, vector<8x32xf32> -> vector<8x32xf32>
    %15 = arith.addf %8, %14 : vector<8x32xf32>
    %16 = vector.extract_strided_slice %2 {offsets = [2, 0], sizes = [8, 32], strides = [1, 1]} : vector<10x32xf32> to vector<8x32xf32>
    %17 = arith.truncf %16 : vector<8x32xf32> to vector<8x32xbf16>
    %c2 = arith.constant 2 : index
    %c0_8 = arith.constant 0 : index
    %c0_9 = arith.constant 0 : index
    %18 = vector.load %arg2[%c2, %c0_8, %c0_9] : memref<3x32x32xf32, #tpu.memory_space<vmem>>, vector<1x32x32xf32>
    %19 = vector.shape_cast %18 : vector<1x32x32xf32> to vector<32x32xf32>
    %20 = arith.truncf %19 : vector<32x32xf32> to vector<32x32xbf16>
    %cst_10 = arith.constant dense<0.000000e+00> : vector<8x32xf32>
    %21 = tpu.matmul %17, %20, %cst_10 {dimension_numbers = #tpu.dot_dimension_numbers<[1], [0], [0], [1], [0, 0, 1, 1], [], []>} : vector<8x32xbf16>, vector<32x32xbf16>, vector<8x32xf32> -> vector<8x32xf32>
    %22 = arith.addf %15, %21 : vector<8x32xf32>
    %c0_11 = arith.constant 0 : index
    %c0_12 = arith.constant 0 : index
    %23 = vector.load %arg3[%c0_11, %c0_12] : memref<1x32xf32, #tpu.memory_space<vmem>>, vector<1x32xf32>
    %24 = vector.broadcast %23 : vector<1x32xf32> to vector<8x32xf32>
    %25 = arith.addf %22, %24 : vector<8x32xf32>
    %cst_13 = arith.constant 0.000000e+00 : f32
    %26 = vector.broadcast %cst_13 : f32 to vector<8x32xf32>
    %27 = arith.maximumf %25, %26 : vector<8x32xf32>
    %28 = arith.truncf %27 : vector<8x32xf32> to vector<8x32xbf16>
    %c0_14 = arith.constant 0 : index
    %c0_15 = arith.constant 0 : index
    %29 = vector.load %arg4[%c0_14, %c0_15] : memref<32x32xf32, #tpu.memory_space<vmem>>, vector<32x32xf32>
    %30 = arith.truncf %29 : vector<32x32xf32> to vector<32x32xbf16>
    %cst_16 = arith.constant dense<0.000000e+00> : vector<8x32xf32>
    %31 = tpu.matmul %28, %30, %cst_16 {dimension_numbers = #tpu.dot_dimension_numbers<[1], [0], [0], [1], [0, 0, 1, 1], [], []>} : vector<8x32xbf16>, vector<32x32xbf16>, vector<8x32xf32> -> vector<8x32xf32>
    %c0_17 = arith.constant 0 : index
    %c0_18 = arith.constant 0 : index
    %32 = vector.load %arg5[%c0_17, %c0_18] : memref<1x32xf32, #tpu.memory_space<vmem>>, vector<1x32xf32>
    %33 = vector.broadcast %32 : vector<1x32xf32> to vector<8x32xf32>
    %34 = arith.addf %31, %33 : vector<8x32xf32>
    %35 = vector.extract_strided_slice %2 {offsets = [1, 0], sizes = [8, 32], strides = [1, 1]} : vector<10x32xf32> to vector<8x32xf32>
    %36 = arith.addf %34, %35 : vector<8x32xf32>
    %37 = arith.truncf %36 : vector<8x32xf32> to vector<8x32xbf16>
    %c0_19 = arith.constant 0 : index
    %c0_20 = arith.constant 0 : index
    %c0_21 = arith.constant 0 : index
    %38 = vector.load %arg6[%c0_19, %c0_20, %c0_21] : memref<1x8x32xbf16, #tpu.memory_space<vmem>>, vector<1x8x32xbf16>
    %39 = vector.shape_cast %38 : vector<1x8x32xbf16> to vector<8x32xbf16>
    %40 = vector.shape_cast %37 : vector<8x32xbf16> to vector<1x8x32xbf16>
    tpu.vector_store %arg6[%c0_19, %c0_20, %c0_21], %40 {strides = array<i32>} : memref<1x8x32xbf16, #tpu.memory_space<vmem>>, vector<1x8x32xbf16>,
    return
  }
  func.func @transform_0(%arg0: i32) -> (i32, i32, i32) {
    %c0_i32 = arith.constant 0 : i32
    %c0_i32_0 = arith.constant 0 : i32
    %c0_i32_1 = arith.constant 0 : i32
    return %arg0, %c0_i32, %c0_i32_0 : i32, i32, i32
  }
  func.func @transform_1(%arg0: i32) -> (i32, i32, i32) {
    %c0_i32 = arith.constant 0 : i32
    %c0_i32_0 = arith.constant 0 : i32
    %c0_i32_1 = arith.constant 0 : i32
    %c0_i32_2 = arith.constant 0 : i32
    return %c0_i32, %c0_i32_0, %c0_i32_1 : i32, i32, i32
  }
  func.func @transform_2(%arg0: i32) -> (i32, i32) {
    %c0_i32 = arith.constant 0 : i32
    %c0_i32_0 = arith.constant 0 : i32
    %c0_i32_1 = arith.constant 0 : i32
    return %c0_i32, %c0_i32_0 : i32, i32
  }
  func.func @transform_3(%arg0: i32) -> (i32, i32) {
    %c0_i32 = arith.constant 0 : i32
    %c0_i32_0 = arith.constant 0 : i32
    %c0_i32_1 = arith.constant 0 : i32
    return %c0_i32, %c0_i32_0 : i32, i32
  }
  func.func @transform_4(%arg0: i32) -> (i32, i32) {
    %c0_i32 = arith.constant 0 : i32
    %c0_i32_0 = arith.constant 0 : i32
    %c0_i32_1 = arith.constant 0 : i32
    return %c0_i32, %c0_i32_0 : i32, i32
  }
  func.func @transform_5(%arg0: i32) -> (i32, i32, i32) {
    %c0_i32 = arith.constant 0 : i32
    %c0_i32_0 = arith.constant 0 : i32
    %c0_i32_1 = arith.constant 0 : i32
    return %arg0, %c0_i32, %c0_i32_0 : i32, i32, i32
  }
}

module attributes {stable_mosaic.version = 11 : i64} {
  func.func @_res_layer_kernel(%arg0: i32, %arg1: memref<1x12x32xbf16, #tpu.memory_space<vmem>>, %arg2: memref<3x32x32xf32, #tpu.memory_space<vmem>>, %arg3: memref<1x32xf32, #tpu.memory_space<vmem>>, %arg4: memref<32x32xf32, #tpu.memory_space<vmem>>, %arg5: memref<1x32xf32, #tpu.memory_space<vmem>>, %arg6: memref<1x8x32xbf16, #tpu.memory_space<vmem>>) attributes {dimension_semantics = [#tpu.dimension_semantics<parallel>], iteration_bounds = array<i64: 2>, scalar_prefetch = 0 : i64, scratch_operands = 0 : i64, tpu.core_type = #tpu.core_type<tc>, window_params = [{transform_indices = @transform_0, window_bounds = array<i64: 1, 12, 32>}, {pipeline_mode = #tpu.pipeline_mode<synchronous>, transform_indices = @transform_1, window_bounds = array<i64: 3, 32, 32>}, {pipeline_mode = #tpu.pipeline_mode<synchronous>, transform_indices = @transform_2, window_bounds = array<i64: 1, 32>}, {pipeline_mode = #tpu.pipeline_mode<synchronous>, transform_indices = @transform_3, window_bounds = array<i64: 32, 32>}, {pipeline_mode = #tpu.pipeline_mode<synchronous>, transform_indices = @transform_4, window_bounds = array<i64: 1, 32>}, {transform_indices = @transform_5, window_bounds = array<i64: 1, 8, 32>}]} {
    %c0 = arith.constant 0 : index
    %c0_0 = arith.constant 0 : index
    %c0_1 = arith.constant 0 : index
    %0 = vector.load %arg1[%c0, %c0_0, %c0_1] : memref<1x12x32xbf16, #tpu.memory_space<vmem>>, vector<1x12x32xbf16>
    %1 = vector.shape_cast %0 : vector<1x12x32xbf16> to vector<12x32xbf16>
    %2 = arith.extf %1 : vector<12x32xbf16> to vector<12x32xf32>
    %3 = vector.extract_strided_slice %2 {offsets = [0, 0], sizes = [8, 32], strides = [1, 1]} : vector<12x32xf32> to vector<8x32xf32>
    %4 = arith.truncf %3 : vector<8x32xf32> to vector<8x32xbf16>
    %c0_2 = arith.constant 0 : index
    %c0_3 = arith.constant 0 : index
    %c0_4 = arith.constant 0 : index
    %5 = vector.load %arg2[%c0_2, %c0_3, %c0_4] : memref<3x32x32xf32, #tpu.memory_space<vmem>>, vector<1x32x32xf32>
    %6 = vector.shape_cast %5 : vector<1x32x32xf32> to vector<32x32xf32>
    %7 = arith.truncf %6 : vector<32x32xf32> to vector<32x32xbf16>
    %cst = arith.constant dense<0.000000e+00> : vector<8x32xf32>
    %8 = tpu.matmul %4, %7, %cst {dimension_numbers = #tpu.dot_dimension_numbers<[1], [0], [0], [1], [0, 0, 1, 1], [], []>} : vector<8x32xbf16>, vector<32x32xbf16>, vector<8x32xf32> -> vector<8x32xf32>
    %9 = vector.extract_strided_slice %2 {offsets = [2, 0], sizes = [8, 32], strides = [1, 1]} : vector<12x32xf32> to vector<8x32xf32>
    %10 = arith.truncf %9 : vector<8x32xf32> to vector<8x32xbf16>
    %c1 = arith.constant 1 : index
    %c0_5 = arith.constant 0 : index
    %c0_6 = arith.constant 0 : index
    %11 = vector.load %arg2[%c1, %c0_5, %c0_6] : memref<3x32x32xf32, #tpu.memory_space<vmem>>, vector<1x32x32xf32>
    %12 = vector.shape_cast %11 : vector<1x32x32xf32> to vector<32x32xf32>
    %13 = arith.truncf %12 : vector<32x32xf32> to vector<32x32xbf16>
    %cst_7 = arith.constant dense<0.000000e+00> : vector<8x32xf32>
    %14 = tpu.matmul %10, %13, %cst_7 {dimension_numbers = #tpu.dot_dimension_numbers<[1], [0], [0], [1], [0, 0, 1, 1], [], []>} : vector<8x32xbf16>, vector<32x32xbf16>, vector<8x32xf32> -> vector<8x32xf32>
    %15 = arith.addf %8, %14 : vector<8x32xf32>
    %16 = vector.extract_strided_slice %2 {offsets = [4, 0], sizes = [8, 32], strides = [1, 1]} : vector<12x32xf32> to vector<8x32xf32>
    %17 = arith.truncf %16 : vector<8x32xf32> to vector<8x32xbf16>
    %c2 = arith.constant 2 : index
    %c0_8 = arith.constant 0 : index
    %c0_9 = arith.constant 0 : index
    %18 = vector.load %arg2[%c2, %c0_8, %c0_9] : memref<3x32x32xf32, #tpu.memory_space<vmem>>, vector<1x32x32xf32>
    %19 = vector.shape_cast %18 : vector<1x32x32xf32> to vector<32x32xf32>
    %20 = arith.truncf %19 : vector<32x32xf32> to vector<32x32xbf16>
    %cst_10 = arith.constant dense<0.000000e+00> : vector<8x32xf32>
    %21 = tpu.matmul %17, %20, %cst_10 {dimension_numbers = #tpu.dot_dimension_numbers<[1], [0], [0], [1], [0, 0, 1, 1], [], []>} : vector<8x32xbf16>, vector<32x32xbf16>, vector<8x32xf32> -> vector<8x32xf32>
    %22 = arith.addf %15, %21 : vector<8x32xf32>
    %c0_11 = arith.constant 0 : index
    %c0_12 = arith.constant 0 : index
    %23 = vector.load %arg3[%c0_11, %c0_12] : memref<1x32xf32, #tpu.memory_space<vmem>>, vector<1x32xf32>
    %24 = vector.broadcast %23 : vector<1x32xf32> to vector<8x32xf32>
    %25 = arith.addf %22, %24 : vector<8x32xf32>
    %cst_13 = arith.constant 0.000000e+00 : f32
    %26 = vector.broadcast %cst_13 : f32 to vector<8x32xf32>
    %27 = arith.maximumf %25, %26 : vector<8x32xf32>
    %28 = arith.truncf %27 : vector<8x32xf32> to vector<8x32xbf16>
    %c0_14 = arith.constant 0 : index
    %c0_15 = arith.constant 0 : index
    %29 = vector.load %arg4[%c0_14, %c0_15] : memref<32x32xf32, #tpu.memory_space<vmem>>, vector<32x32xf32>
    %30 = arith.truncf %29 : vector<32x32xf32> to vector<32x32xbf16>
    %cst_16 = arith.constant dense<0.000000e+00> : vector<8x32xf32>
    %31 = tpu.matmul %28, %30, %cst_16 {dimension_numbers = #tpu.dot_dimension_numbers<[1], [0], [0], [1], [0, 0, 1, 1], [], []>} : vector<8x32xbf16>, vector<32x32xbf16>, vector<8x32xf32> -> vector<8x32xf32>
    %c0_17 = arith.constant 0 : index
    %c0_18 = arith.constant 0 : index
    %32 = vector.load %arg5[%c0_17, %c0_18] : memref<1x32xf32, #tpu.memory_space<vmem>>, vector<1x32xf32>
    %33 = vector.broadcast %32 : vector<1x32xf32> to vector<8x32xf32>
    %34 = arith.addf %31, %33 : vector<8x32xf32>
    %35 = vector.extract_strided_slice %2 {offsets = [2, 0], sizes = [8, 32], strides = [1, 1]} : vector<12x32xf32> to vector<8x32xf32>
    %36 = arith.addf %34, %35 : vector<8x32xf32>
    %37 = arith.truncf %36 : vector<8x32xf32> to vector<8x32xbf16>
    %c0_19 = arith.constant 0 : index
    %c0_20 = arith.constant 0 : index
    %c0_21 = arith.constant 0 : index
    %38 = vector.load %arg6[%c0_19, %c0_20, %c0_21] : memref<1x8x32xbf16, #tpu.memory_space<vmem>>, vector<1x8x32xbf16>
    %39 = vector.shape_cast %38 : vector<1x8x32xbf16> to vector<8x32xbf16>
    %40 = vector.shape_cast %37 : vector<8x32xbf16> to vector<1x8x32xbf16>
    tpu.vector_store %arg6[%c0_19, %c0_20, %c0_21], %40 {strides = array<i32>} : memref<1x8x32xbf16, #tpu.memory_space<vmem>>, vector<1x8x32xbf16>,
    return
  }
  func.func @transform_0(%arg0: i32) -> (i32, i32, i32) {
    %c0_i32 = arith.constant 0 : i32
    %c0_i32_0 = arith.constant 0 : i32
    %c0_i32_1 = arith.constant 0 : i32
    return %arg0, %c0_i32, %c0_i32_0 : i32, i32, i32
  }
  func.func @transform_1(%arg0: i32) -> (i32, i32, i32) {
    %c0_i32 = arith.constant 0 : i32
    %c0_i32_0 = arith.constant 0 : i32
    %c0_i32_1 = arith.constant 0 : i32
    %c0_i32_2 = arith.constant 0 : i32
    return %c0_i32, %c0_i32_0, %c0_i32_1 : i32, i32, i32
  }
  func.func @transform_2(%arg0: i32) -> (i32, i32) {
    %c0_i32 = arith.constant 0 : i32
    %c0_i32_0 = arith.constant 0 : i32
    %c0_i32_1 = arith.constant 0 : i32
    return %c0_i32, %c0_i32_0 : i32, i32
  }
  func.func @transform_3(%arg0: i32) -> (i32, i32) {
    %c0_i32 = arith.constant 0 : i32
    %c0_i32_0 = arith.constant 0 : i32
    %c0_i32_1 = arith.constant 0 : i32
    return %c0_i32, %c0_i32_0 : i32, i32
  }
  func.func @transform_4(%arg0: i32) -> (i32, i32) {
    %c0_i32 = arith.constant 0 : i32
    %c0_i32_0 = arith.constant 0 : i32
    %c0_i32_1 = arith.constant 0 : i32
    return %c0_i32, %c0_i32_0 : i32, i32
  }
  func.func @transform_5(%arg0: i32) -> (i32, i32, i32) {
    %c0_i32 = arith.constant 0 : i32
    %c0_i32_0 = arith.constant 0 : i32
    %c0_i32_1 = arith.constant 0 : i32
    return %arg0, %c0_i32, %c0_i32_0 : i32, i32, i32
  }
}

module attributes {stable_mosaic.version = 11 : i64} {
  func.func @_conv_out_kernel(%arg0: i32, %arg1: memref<1x5x32xbf16, #tpu.memory_space<vmem>>, %arg2: memref<1x5x32xbf16, #tpu.memory_space<vmem>>, %arg3: memref<3x32x8xf32, #tpu.memory_space<vmem>>, %arg4: memref<1x8xf32, #tpu.memory_space<vmem>>, %arg5: memref<1x4x8xbf16, #tpu.memory_space<vmem>>) attributes {dimension_semantics = [#tpu.dimension_semantics<parallel>], iteration_bounds = array<i64: 2>, scalar_prefetch = 0 : i64, scratch_operands = 0 : i64, tpu.core_type = #tpu.core_type<tc>, window_params = [{transform_indices = @transform_0, window_bounds = array<i64: 1, 5, 32>}, {transform_indices = @transform_1, window_bounds = array<i64: 1, 5, 32>}, {pipeline_mode = #tpu.pipeline_mode<synchronous>, transform_indices = @transform_2, window_bounds = array<i64: 3, 32, 8>}, {pipeline_mode = #tpu.pipeline_mode<synchronous>, transform_indices = @transform_3, window_bounds = array<i64: 1, 8>}, {transform_indices = @transform_4, window_bounds = array<i64: 1, 4, 8>}]} {
    %c0 = arith.constant 0 : index
    %c0_0 = arith.constant 0 : index
    %c0_1 = arith.constant 0 : index
    %0 = vector.load %arg1[%c0, %c0_0, %c0_1] : memref<1x5x32xbf16, #tpu.memory_space<vmem>>, vector<1x5x32xbf16>
    %1 = vector.shape_cast %0 : vector<1x5x32xbf16> to vector<5x32xbf16>
    %2 = arith.extf %1 : vector<5x32xbf16> to vector<5x32xf32>
    %c0_2 = arith.constant 0 : index
    %c0_3 = arith.constant 0 : index
    %c0_4 = arith.constant 0 : index
    %3 = vector.load %arg2[%c0_2, %c0_3, %c0_4] : memref<1x5x32xbf16, #tpu.memory_space<vmem>>, vector<1x5x32xbf16>
    %4 = vector.shape_cast %3 : vector<1x5x32xbf16> to vector<5x32xbf16>
    %5 = arith.extf %4 : vector<5x32xbf16> to vector<5x32xf32>
    %6 = vector.extract_strided_slice %2 {offsets = [0, 0], sizes = [4, 32], strides = [1, 1]} : vector<5x32xf32> to vector<4x32xf32>
    %7 = arith.truncf %6 : vector<4x32xf32> to vector<4x32xbf16>
    %c0_5 = arith.constant 0 : index
    %c0_6 = arith.constant 0 : index
    %c0_7 = arith.constant 0 : index
    %8 = vector.load %arg3[%c0_5, %c0_6, %c0_7] : memref<3x32x8xf32, #tpu.memory_space<vmem>>, vector<1x32x8xf32>
    %9 = vector.shape_cast %8 : vector<1x32x8xf32> to vector<32x8xf32>
    %10 = arith.truncf %9 : vector<32x8xf32> to vector<32x8xbf16>
    %cst = arith.constant dense<0.000000e+00> : vector<4x8xf32>
    %11 = tpu.matmul %7, %10, %cst {dimension_numbers = #tpu.dot_dimension_numbers<[1], [0], [0], [1], [0, 0, 1, 1], [], []>} : vector<4x32xbf16>, vector<32x8xbf16>, vector<4x8xf32> -> vector<4x8xf32>
    %12 = vector.extract_strided_slice %5 {offsets = [0, 0], sizes = [4, 32], strides = [1, 1]} : vector<5x32xf32> to vector<4x32xf32>
    %13 = arith.truncf %12 : vector<4x32xf32> to vector<4x32xbf16>
    %c1 = arith.constant 1 : index
    %c0_8 = arith.constant 0 : index
    %c0_9 = arith.constant 0 : index
    %14 = vector.load %arg3[%c1, %c0_8, %c0_9] : memref<3x32x8xf32, #tpu.memory_space<vmem>>, vector<1x32x8xf32>
    %15 = vector.shape_cast %14 : vector<1x32x8xf32> to vector<32x8xf32>
    %16 = arith.truncf %15 : vector<32x8xf32> to vector<32x8xbf16>
    %cst_10 = arith.constant dense<0.000000e+00> : vector<4x8xf32>
    %17 = tpu.matmul %13, %16, %cst_10 {dimension_numbers = #tpu.dot_dimension_numbers<[1], [0], [0], [1], [0, 0, 1, 1], [], []>} : vector<4x32xbf16>, vector<32x8xbf16>, vector<4x8xf32> -> vector<4x8xf32>
    %18 = arith.addf %11, %17 : vector<4x8xf32>
    %19 = vector.extract_strided_slice %2 {offsets = [1, 0], sizes = [4, 32], strides = [1, 1]} : vector<5x32xf32> to vector<4x32xf32>
    %20 = arith.truncf %19 : vector<4x32xf32> to vector<4x32xbf16>
    %c2 = arith.constant 2 : index
    %c0_11 = arith.constant 0 : index
    %c0_12 = arith.constant 0 : index
    %21 = vector.load %arg3[%c2, %c0_11, %c0_12] : memref<3x32x8xf32, #tpu.memory_space<vmem>>, vector<1x32x8xf32>
    %22 = vector.shape_cast %21 : vector<1x32x8xf32> to vector<32x8xf32>
    %23 = arith.truncf %22 : vector<32x8xf32> to vector<32x8xbf16>
    %cst_13 = arith.constant dense<0.000000e+00> : vector<4x8xf32>
    %24 = tpu.matmul %20, %23, %cst_13 {dimension_numbers = #tpu.dot_dimension_numbers<[1], [0], [0], [1], [0, 0, 1, 1], [], []>} : vector<4x32xbf16>, vector<32x8xbf16>, vector<4x8xf32> -> vector<4x8xf32>
    %25 = arith.addf %18, %24 : vector<4x8xf32>
    %c0_14 = arith.constant 0 : index
    %c0_15 = arith.constant 0 : index
    %26 = vector.load %arg4[%c0_14, %c0_15] : memref<1x8xf32, #tpu.memory_space<vmem>>, vector<1x8xf32>
    %27 = vector.broadcast %26 : vector<1x8xf32> to vector<4x8xf32>
    %28 = arith.addf %25, %27 : vector<4x8xf32>
    %cst_16 = arith.constant 0.000000e+00 : f32
    %29 = vector.broadcast %cst_16 : f32 to vector<4x8xf32>
    %30 = arith.maximumf %28, %29 : vector<4x8xf32>
    %31 = arith.truncf %30 : vector<4x8xf32> to vector<4x8xbf16>
    %c0_17 = arith.constant 0 : index
    %c0_18 = arith.constant 0 : index
    %c0_19 = arith.constant 0 : index
    %32 = vector.load %arg5[%c0_17, %c0_18, %c0_19] : memref<1x4x8xbf16, #tpu.memory_space<vmem>>, vector<1x4x8xbf16>
    %33 = vector.shape_cast %32 : vector<1x4x8xbf16> to vector<4x8xbf16>
    %34 = vector.shape_cast %31 : vector<4x8xbf16> to vector<1x4x8xbf16>
    tpu.vector_store %arg5[%c0_17, %c0_18, %c0_19], %34 {strides = array<i32>} : memref<1x4x8xbf16, #tpu.memory_space<vmem>>, vector<1x4x8xbf16>,
    return
  }
  func.func @transform_0(%arg0: i32) -> (i32, i32, i32) {
    %c0_i32 = arith.constant 0 : i32
    %c0_i32_0 = arith.constant 0 : i32
    %c0_i32_1 = arith.constant 0 : i32
    return %arg0, %c0_i32, %c0_i32_0 : i32, i32, i32
  }
  func.func @transform_1(%arg0: i32) -> (i32, i32, i32) {
    %c0_i32 = arith.constant 0 : i32
    %c0_i32_0 = arith.constant 0 : i32
    %c0_i32_1 = arith.constant 0 : i32
    return %arg0, %c0_i32, %c0_i32_0 : i32, i32, i32
  }
  func.func @transform_2(%arg0: i32) -> (i32, i32, i32) {
    %c0_i32 = arith.constant 0 : i32
    %c0_i32_0 = arith.constant 0 : i32
    %c0_i32_1 = arith.constant 0 : i32
    %c0_i32_2 = arith.constant 0 : i32
    return %c0_i32, %c0_i32_0, %c0_i32_1 : i32, i32, i32
  }
  func.func @transform_3(%arg0: i32) -> (i32, i32) {
    %c0_i32 = arith.constant 0 : i32
    %c0_i32_0 = arith.constant 0 : i32
    %c0_i32_1 = arith.constant 0 : i32
    return %c0_i32, %c0_i32_0 : i32, i32
  }
  func.func @transform_4(%arg0: i32) -> (i32, i32, i32) {
    %c0_i32 = arith.constant 0 : i32
    %c0_i32_0 = arith.constant 0 : i32
    %c0_i32_1 = arith.constant 0 : i32
    return %arg0, %c0_i32, %c0_i32_0 : i32, i32, i32
  }
}

</mosaic_0001>

<bundles_post_ra>
// kernel: multi_stage_forward.8
= control target key start
LH: loop header
LB: loop body
LE: loop exit
PB: predicated region body
PF: predicated region fallthrough
CT: control target
= control target key end

     0   :  { %s369_s12 = smov 0   ;;  %s401_s0 = inlined_call_operand.vmem [shape: f32[2,16,32], index: 0, kind: input, shape index: {}]   ;;  %s402_s1 = inlined_call_operand.vmem [shape: f32[32,32], index: 1, kind: input, shape index: {}]   ;;  %s403_s2 = inlined_call_operand.vmem [shape: f32[1,32], index: 2, kind: input, shape index: {}]   ;;  %s404_s3 = inlined_call_operand.vmem [shape: bf16[2,16,32], index: 3, kind: output, shape index: {}]  }
   0x1 LB: > { %s299_s13 = sadd.s32 4294967295, %s345_s12   ;;  %p303_p0 = scmp.ge.s32.totalorder %s345_s12, 1  ;;  %s345_s12 = sphi %s369_s12, %s13_s12  }
   0x2   : > { %p137_p1 = scmp.lt.s32.totalorder %s345_s12, 3 }
   0x4   : > { %p138_p2 = pnand %p303_p0, %p137_p1 }
   0x5   : > { %p161_p3 = scmp.lt.s32.totalorder (!%p138_p2), %s299_s13, 1 }
   0x6   : > { %141 = sbr.rel (%p138_p2) target bundleno = 223 (0xdf), region = 32 }
   0xb   : > { %v177_v0 = vld [vmem:[%s402_s1 + $0x10] sm:$0xff]  ;;  %v178_v1 = vld [vmem:[%s402_s1 + $0x18] sm:$0xff]  ;;  %v175_v2 = vld [vmem:[%s402_s1] sm:$0xff]  ;;  %v347_v3 = vmov 0.0   ;;  %vm348_vm0 = vmmov 0   ;;  %s406_s13 = smov (!%p161_p3, %s299_s13), 1 }
   0xc   : > { %321 = vmatprep.subr.bf16.mxu0 %v347_v3  ;;  %v180_v4 = vpack.c.bf16 %v178_v1, %v177_v0  ;;  %v176_v5 = vld [vmem:[%s402_s1 + $0x8] sm:$0xff]  ;;  %325 = vmatprep.mubr.msk.bf16.mxu0 %vm348_vm0, %v347_v3  ;;  %s314_s22 = sshll.u32 %s406_s13, 4  ;;  %vm188_vm1 = vcmask 261120   ;;  %v308_v10 = vld [vmem:[%s403_s2] ss:$0 sm:$0xff]  ;;  %s315_s28 = sshll.u32 %s406_s13, 3 }
   0xd   : > { %v179_v6 = vpack.c.bf16 %v176_v5, %v175_v2  ;;  %s165_s25 = scalar_lea.vmem %s401_s0, %s314_s22  ;;  %s170_s4 = scalar_lea.vmem %s404_s3, %s315_s28  ;;  %vm241_vm2 = vcmask 257024  }
   0xe   : > { %322 = vmatpush3.bf16.msra.mxu0 %v180_v4  ;;  %v172_v7 = vld [vmem:[%s165_s25] sm:$0xff]  ;;  %v173_v8 = vld [vmem:[%s165_s25 + $0x8] sm:$0xff] }
   0xf   : > { %323 = vmatprep.subr.bf16.mxu0 %v347_v3  ;;  %v174_v9 = vpack.c.bf16 %v173_v8, %v172_v7 }
  0x12   : > { %324 = vmatpush3.bf16.msra.mxu0 %v179_v6 }
  0x15   : > { %326 = vmatmul.mubr.msk.bf16.vlgmr.msra.gmra.mxu0 %vm188_vm1, %v174_v9 }
  0xd5   : > { %v226_v11 = vpop.f32.mrf.mxu0 }
  0xd6   : > { %v227_v12 = vadd.f32 %v308_v10, %v226_v11 }
  0xd7   : > { %v327_v13 = vpop.f32.mrf.mxu0 }
  0xd8   : > { %v316_v14 = vpack.c.bf16 %v227_v12, %v227_v12 }
  0xd9   : > { %v229_v15 = vpop.f32.mrf.mxu0 }
  0xda   : > { %242 = vst.msk [vmem:[%s170_s4] sm:$0xf] %vm241_vm2, %v316_v14  ;;  %v230_v16 = vadd.f32 %v308_v10, %v229_v15 }
  0xdb   : > { %v328_v17 = vpop.f32.mrf.mxu0 }
  0xdc   : > { %v317_v18 = vpack.c.bf16 %v230_v16, %v230_v16 }
  0xde   : > { %243 = vst.msk [vmem:[%s170_s4 + $0x4] sm:$0xf] %vm241_vm2, %v317_v18 }
  0xdf PF: > { %s13_s12 = sadd.s32 1, %s345_s12  }
  0xe0   : > { %p10_p4 = scmp.ge.s32.totalorder %s13_s12, 4  }
  0xe2   :  { %12 = sbr.rel (!%p10_p4) target bundleno = 1 (0x1), region = 62 }

// kernel: multi_stage_forward.9
= control target key start
LH: loop header
LB: loop body
LE: loop exit
PB: predicated region body
PF: predicated region fallthrough
CT: control target
= control target key end

     0   :  { %s684_s18 = smov 0   ;;  %s789_s0 = inlined_call_operand.vmem [shape: bf16[2,18,32], index: 0, kind: input, shape index: {}]   ;;  %s790_s1 = inlined_call_operand.vmem [shape: f32[3,32,32], index: 1, kind: input, shape index: {}]   ;;  %s791_s2 = inlined_call_operand.vmem [shape: f32[1,32], index: 2, kind: input, shape index: {}]   ;;  %s792_s3 = inlined_call_operand.vmem [shape: f32[32,32], index: 3, kind: input, shape index: {}]   ;;  %s793_s4 = inlined_call_operand.vmem [shape: f32[1,32], index: 4, kind: input, shape index: {}]   ;;  %s794_s5 = inlined_call_operand.vmem [shape: bf16[2,16,32], index: 5, kind: output, shape index: {}]  }
   0x1 LB: > { %s555_s19 = sadd.s32 4294967295, %s650_s18   ;;  %p559_p0 = scmp.ge.s32.totalorder %s650_s18, 1  ;;  %s650_s18 = sphi %s684_s18, %s15_s18  }
   0x2   : > { %p187_p1 = scmp.lt.s32.totalorder %s650_s18, 3 }
   0x4   : > { %p188_p2 = pnand %p559_p0, %p187_p1 }
   0x5   : > { %p701_p3 = scmp.lt.s32.totalorder (!%p188_p2), %s555_s19, 1 }
   0x6   : > { %191 = sbr.rel (%p188_p2) target bundleno = 440 (0x1b8), region = 40 }
   0xb   : > { %v567_v0 = vld [vmem:[%s790_s1 + $0x30] sm:$0xff]  ;;  %v568_v1 = vld [vmem:[%s790_s1 + $0x38] sm:$0xff]  ;;  %v652_v3 = vmov 0.0   ;;  %v565_v6 = vld [vmem:[%s790_s1 + $0x20] sm:$0xff]  ;;  %vm653_vm0 = vmmov 0   ;;  %s797_s19 = smov (!%p701_p3, %s555_s19), 1 }
   0xc   : > { %v235_v2 = vld [vmem:[%s790_s1 + $0x10] sm:$0xff]  ;;  %598 = vmatprep.subr.bf16.mxu0 %v652_v3  ;;  %v246_v4 = vpack.c.bf16 %v568_v1, %v567_v0  ;;  %606 = vmatprep.subr.bf16.mxu1 %v652_v3  ;;  %v236_v5 = vld [vmem:[%s790_s1 + $0x18] sm:$0xff]  ;;  %v566_v7 = vld [vmem:[%s790_s1 + $0x28] sm:$0xff]  ;;  %s630_s12 = smul.u32 12, %s797_s19  ;;  %vm260_vm1 = vcmask 261120   ;;  %vm357_vm3 = vcmask 1046528  }
   0xd   : > { %v238_v8 = vpack.c.bf16 %v236_v5, %v235_v2  ;;  %v233_v9 = vld [vmem:[%s790_s1] sm:$0xff]  ;;  %v234_v10 = vld [vmem:[%s790_s1 + $0x8] sm:$0xff]  ;;  %602 = vmatprep.mubr.msk.bf16.mxu0 %vm653_vm0, %v652_v3  ;;  %610 = vmatprep.mubr.msk.bf16.mxu1 %vm653_vm0, %v652_v3  ;;  %v245_v11 = vpack.c.bf16 %v566_v7, %v565_v6  ;;  %v573_v19 = vld [vmem:[%s790_s1 + $0x50] sm:$0xff]  ;;  %vm247_vm2 = vsmask.f32 7424  ;;  %s583_s13 = sshll.u32 %s797_s19, 3 }
   0xe   : > { %599 = vmatpush3.bf16.msra.mxu0 %v246_v4  ;;  %v237_v12 = vpack.c.bf16 %v234_v10, %v233_v9  ;;  %s219_s15 = scalar_lea.vmem %s789_s0, %s630_s12  ;;  %v574_v20 = vld [vmem:[%s790_s1 + $0x58] sm:$0xff]  ;;  %v571_v25 = vld [vmem:[%s790_s1 + $0x40] sm:$0xff]  ;;  %v572_v26 = vld [vmem:[%s790_s1 + $0x48] sm:$0xff]  ;;  %s224_s16 = scalar_lea.vmem %s794_s5, %s583_s13  ;;  %vm497_vm4 = vcmask 257024  }
   0xf   : > { %607 = vmatpush3.bf16.msra.mxu1 %v238_v8  ;;  %600 = vmatprep.subr.bf16.mxu0 %v652_v3  ;;  %v730_v13 = vld [vmem:[%s219_s15] sm:$0xff]   ;;  %v732_v14 = vld [vmem:[%s219_s15 + $0x8] sm:$0x1]  ;;  %v354_v24 = vpack.c.bf16 %v574_v20, %v573_v19  ;;  %v353_v28 = vpack.c.bf16 %v572_v26, %v571_v25  ;;  %v421_v32 = vld [vmem:[%s792_s3 + $0x10] sm:$0xff] }
  0x10   : > { %608 = vmatprep.subr.bf16.mxu1 %v652_v3  ;;  %v564_v15 = vcombine.low %v732_v14, %v732_v14  ;;  %v249_v16 = vshrl.u32 %v730_v13, 16  ;;  %v251_v17 = vshll.u32 %v730_v13, 16  ;;  %v358_v29 = vrot.slane %v730_v13, 1  ;;  %v422_v33 = vld [vmem:[%s792_s3 + $0x18] sm:$0xff]  ;;  %v419_v35 = vld [vmem:[%s792_s3] sm:$0xff]  ;;  %v420_v36 = vld [vmem:[%s792_s3 + $0x8] sm:$0xff] }
  0x11   : > { %v424_v34 = vpack.c.bf16 %v422_v33, %v421_v32  ;;  %v423_v37 = vpack.c.bf16 %v420_v36, %v419_v35  ;;  %v576_v49 = vld [vmem:[%s791_s2] ss:$0 sm:$0xff]  ;;  %v229_v60 = vunpack.c.l.bf16 %v730_v13  ;;  %v230_v61 = vunpack.c.h.bf16 %v730_v13 }
  0x12   : > { %601 = vmatpush3.bf16.msra.mxu0 %v245_v11  ;;  %v256_v18 = vshll.u32 %v564_v15, 16  ;;  %v253_v21 = vrot.slane %v251_v17, 1  ;;  %v359_v30 = vrot.slane %v564_v15, 1  ;;  %v231_v0 = vunpack.c.l.bf16 %v732_v14  ;;  %v577_v1 = vld [vmem:[%s793_s4] ss:$0 sm:$0xff] }
  0x13   : > { %609 = vmatpush3.bf16.msra.mxu1 %v237_v12  ;;  %614 = vmatprep.subr.bf16.mxu0 %v652_v3  ;;  %v480_v62 = vrot.slane %v229_v60, 1  ;;  %v481_v63 = vrot.slane %v230_v61, 1 }
  0x14   : > { %622 = vmatprep.subr.bf16.mxu1 %v652_v3  ;;  %v258_v22 = vrot.slane %v256_v18, 1  ;;  %v254_v23 = vor.u32 %v253_v21, %v249_v16  ;;  %v360_v31 = vsel %vm357_vm3, %v358_v29, %v359_v30  ;;  %v483_v4 = vrot.slane %v231_v0, 1 }
  0x16   : > { %611 = vmatmul.mubr.msk.bf16.vlgmr.msra.gmra.mxu1 %vm260_vm1, %v730_v13  ;;  %v259_v27 = vsel %vm247_vm2, %v254_v23, %v258_v22  ;;  %v484_v9 = vsel %vm357_vm3, %v481_v63, %v483_v4 }
  0x17   : > { %626 = vmatprep.mubr.msk.bf16.mxu1 %vm653_vm0, %v652_v3  ;;  %603 = vmatmul.mubr.msk.bf16.vlgmr.msra.gmra.mxu0 %vm260_vm1, %v259_v27 }
  0x18   : > { %615 = vmatpush3.bf16.msra.mxu0 %v354_v24  ;;  %618 = vmatprep.mubr.msk.bf16.mxu0 %vm653_vm0, %v652_v3 }
  0x19   : > { %616 = vmatprep.subr.bf16.mxu0 %v652_v3  ;;  %623 = vmatpush3.bf16.msra.mxu1 %v424_v34 }
  0x1a   : > { %624 = vmatprep.subr.bf16.mxu1 %v652_v3  ;;  %v482_v3 = vsel %vm357_vm3, %v480_v62, %v481_v63 }
  0x1c   : > { %617 = vmatpush3.bf16.msra.mxu0 %v353_v28 }
  0x1d   : > { %625 = vmatpush3.bf16.msra.mxu1 %v423_v37 }
  0x1f   : > { %619 = vmatmul.mubr.msk.bf16.vlgmr.msra.gmra.mxu0 %vm260_vm1, %v360_v31 }
  0xd6   : > { %v341_v38 = vpop.f32.mrf.mxu1 }
  0xd7   : > { %v298_v41 = vpop.f32.mrf.mxu0 }
  0xd8   : > { %v612_v39 = vpop.f32.mrf.mxu1  ;;  %v342_v46 = vadd.f32 %v341_v38, %v298_v41 }
  0xd9   : > { %v604_v43 = vpop.f32.mrf.mxu0 }
  0xda   : > { %v344_v40 = vpop.f32.mrf.mxu1 }
  0xdb   : > { %v301_v44 = vpop.f32.mrf.mxu0 }
  0xdc   : > { %v613_v42 = vpop.f32.mrf.mxu1  ;;  %v345_v51 = vadd.f32 %v344_v40, %v301_v44 }
  0xdd   : > { %v605_v45 = vpop.f32.mrf.mxu0 }
  0xdf   : > { %v398_v47 = vpop.f32.mrf.mxu0 }
  0xe0   : > { %v405_v48 = vadd.f32 %v398_v47, %v342_v46 }
  0xe1   : > { %v620_v50 = vpop.f32.mrf.mxu0 }
  0xe2   : > { %v414_v53 = vadd.f32 %v576_v49, %v405_v48 }
  0xe3   : > { %v401_v52 = vpop.f32.mrf.mxu0 }
  0xe4   : > { %v406_v54 = vadd.f32 %v401_v52, %v345_v51  ;;  %v416_v57 = vmax.f32 %v414_v53, 0.0 }
  0xe5   : > { %v621_v55 = vpop.f32.mrf.mxu0 }
  0xe6   : > { %v415_v56 = vadd.f32 %v576_v49, %v406_v54 }
  0xe8   : > { %v417_v58 = vmax.f32 %v415_v56, 0.0 }
  0xea   : > { %v418_v59 = vpack.c.bf16 %v417_v58, %v416_v57 }
  0xec   : > { %627 = vmatmul.mubr.msk.bf16.vlgmr.msra.gmra.mxu1 %vm260_vm1, %v418_v59 }
 0x1ac   : > { %v469_v2 = vpop.f32.mrf.mxu1 }
 0x1ad   : > { %v470_v5 = vadd.f32 %v577_v1, %v469_v2 }
 0x1ae   : > { %v628_v6 = vpop.f32.mrf.mxu1 }
 0x1af   : > { %v487_v7 = vadd.f32 %v482_v3, %v470_v5 }
 0x1b0   : > { %v472_v8 = vpop.f32.mrf.mxu1 }
 0x1b1   : > { %v584_v10 = vpack.c.bf16 %v487_v7, %v487_v7  ;;  %v473_v11 = vadd.f32 %v577_v1, %v472_v8 }
 0x1b2   : > { %v629_v12 = vpop.f32.mrf.mxu1 }
 0x1b3   : > { %498 = vst.msk [vmem:[%s224_s16] sm:$0xf] %vm497_vm4, %v584_v10  ;;  %v488_v13 = vadd.f32 %v484_v9, %v473_v11 }
 0x1b5   : > { %v585_v14 = vpack.c.bf16 %v488_v13, %v488_v13 }
 0x1b7   : > { %499 = vst.msk [vmem:[%s224_s16 + $0x4] sm:$0xf] %vm497_vm4, %v585_v14 }
 0x1b8 PF: > { %s15_s18 = sadd.s32 1, %s650_s18  }
 0x1b9   : > { %p12_p4 = scmp.ge.s32.totalorder %s15_s18, 4  }
 0x1bb   :  { %14 = sbr.rel (!%p12_p4) target bundleno = 1 (0x1), region = 72 }

// kernel: multi_stage_forward.11
= control target key start
LH: loop header
LB: loop body
LE: loop exit
PB: predicated region body
PF: predicated region fallthrough
CT: control target
= control target key end

     0   :  { %s571_s15 = smov 0   ;;  %s640_s0 = inlined_call_operand.vmem [shape: bf16[2,9,32], index: 0, kind: input, shape index: {}]   ;;  %s641_s1 = inlined_call_operand.vmem [shape: bf16[2,9,32], index: 1, kind: input, shape index: {}]   ;;  %s642_s2 = inlined_call_operand.vmem [shape: f32[3,32,8], index: 2, kind: input, shape index: {}]   ;;  %s643_s3 = inlined_call_operand.vmem [shape: f32[1,8], index: 3, kind: input, shape index: {}]   ;;  %s644_s4 = inlined_call_operand.vmem [shape: bf16[2,8,8], index: 4, kind: output, shape index: {}]  }
   0x1 LB: > { %s461_s16 = sadd.s32 4294967295, %s542_s15   ;;  %p465_p0 = scmp.ge.s32.totalorder %s542_s15, 1  ;;  %s542_s15 = sphi %s571_s15, %s14_s15  }
   0x2   : > { %p172_p1 = scmp.lt.s32.totalorder %s542_s15, 3 }
   0x4   : > { %p173_p2 = pnand %p465_p0, %p172_p1 }
   0x5   : > { %p202_p3 = scmp.lt.s32.totalorder (!%p173_p2), %s461_s16, 1 }
   0x6   : > { %176 = sbr.rel (%p173_p2) target bundleno = 231 (0xe7), region = 36 }
   0xb   : > { %v475_v0 = vld [vmem:[%s642_s2 + $0x30] sm:$0xff]  ;;  %v476_v1 = vld [vmem:[%s642_s2 + $0x38] sm:$0xff]  ;;  %v544_v3 = vmov 0.0   ;;  %v473_v6 = vld [vmem:[%s642_s2 + $0x20] sm:$0xff]  ;;  %vm545_vm0 = vmmov 0   ;;  %s646_s16 = smov (!%p202_p3, %s461_s16), 1 }
   0xc   : > { %v226_v2 = vld [vmem:[%s642_s2 + $0x10] sm:$0xff]  ;;  %499 = vmatprep.subr.bf16.mxu0 %v544_v3  ;;  %v237_v4 = vpack.c.bf16 %v476_v1, %v475_v0  ;;  %507 = vmatprep.subr.bf16.mxu1 %v544_v3  ;;  %v227_v5 = vld [vmem:[%s642_s2 + $0x18] sm:$0xff]  ;;  %v474_v7 = vld [vmem:[%s642_s2 + $0x28] sm:$0xff]  ;;  %s488_s7 = sshll.u32 %s646_s16, 3  ;;  %vm238_vm1 = vcmask 261120   ;;  %s470_s26 = sshll.u32 %s646_s16, 2 }
   0xd   : > { %v229_v8 = vpack.c.bf16 %v227_v5, %v226_v2  ;;  %v224_v9 = vld [vmem:[%s642_s2] sm:$0xff]  ;;  %v225_v10 = vld [vmem:[%s642_s2 + $0x8] sm:$0xff]  ;;  %503 = vmatprep.mubr.msk.bf16.mxu0 %vm545_vm0, %v544_v3  ;;  %511 = vmatprep.mubr.msk.bf16.mxu1 %vm545_vm0, %v544_v3  ;;  %v236_v11 = vpack.c.bf16 %v474_v7, %v473_v6  ;;  %v482_v13 = vld [vmem:[%s642_s2 + $0x50] sm:$0xff]  ;;  %s211_s14 = scalar_lea.vmem %s641_s1, %s488_s7  ;;  %s206_s19 = scalar_lea.vmem %s640_s0, %s488_s7  ;;  %vm394_vm2 = vcmask 60416  }
   0xe   : > { %500 = vmatpush3.bf16.msra.mxu0 %v237_v4  ;;  %v228_v12 = vpack.c.bf16 %v225_v10, %v224_v9  ;;  %v483_v14 = vld [vmem:[%s642_s2 + $0x58] sm:$0xff]  ;;  %v533_v15 = vld [vmem:[%s211_s14] ss:$0 sps:$4 sm:$0xff]   ;;  %v218_v17 = vld [vmem:[%s206_s19 + $0x4] sm:$0x1]  ;;  %s215_s29 = scalar_lea.vmem %s644_s4, %s470_s26 }
   0xf   : > { %508 = vmatpush3.bf16.msra.mxu1 %v229_v8  ;;  %501 = vmatprep.subr.bf16.mxu0 %v544_v3  ;;  %v217_v16 = vld [vmem:[%s206_s19] sm:$0xf]  ;;  %v332_v19 = vpack.c.bf16 %v483_v14, %v482_v13  ;;  %v481_v22 = vld [vmem:[%s642_s2 + $0x48] sm:$0xff] }
  0x10   : > { %509 = vmatprep.subr.bf16.mxu1 %v544_v3  ;;  %v471_v18 = vcombine.low %v217_v16, %v217_v16  ;;  %v479_v20 = vcombine.low %v217_v16, %v218_v17  ;;  %v480_v21 = vld [vmem:[%s642_s2 + $0x40] sm:$0xff] }
  0x11   : > { %v331_v25 = vpack.c.bf16 %v481_v22, %v480_v21  ;;  %v485_v38 = vld [vmem:[%s643_s3] ss:$0 sm:$0xff] }
  0x12   : > { %502 = vmatpush3.bf16.msra.mxu0 %v236_v11  ;;  %v334_v23 = vshrl.u32 %v479_v20, 16  ;;  %v336_v24 = vshll.u32 %v479_v20, 16 }
  0x13   : > { %510 = vmatpush3.bf16.msra.mxu1 %v228_v12  ;;  %515 = vmatprep.subr.bf16.mxu0 %v544_v3 }
  0x14   : > { %v338_v26 = vrot.slane %v336_v24, 1 }
  0x15   : > { %504 = vmatmul.mubr.msk.bf16.vlgmr.msra.gmra.mxu0 %vm238_vm1, %v533_v15 }
  0x16   : > { %512 = vmatmul.mubr.msk.bf16.vlgmr.msra.gmra.mxu1 %vm238_vm1, %v471_v18  ;;  %516 = vmatpush3.bf16.msra.mxu0 %v332_v19  ;;  %v339_v27 = vor.u32 %v338_v26, %v334_v23 }
  0x17   : > { %517 = vmatprep.subr.bf16.mxu0 %v544_v3  ;;  %519 = vmatprep.mubr.msk.bf16.mxu0 %vm545_vm0, %v544_v3 }
  0x1a   : > { %518 = vmatpush3.bf16.msra.mxu0 %v331_v25 }
  0x1d   : > { %520 = vmatmul.mubr.msk.bf16.vlgmr.msra.gmra.mxu0 %vm238_vm1, %v339_v27 }
  0xd5   : > { %v276_v28 = vpop.f32.mrf.mxu0 }
  0xd6   : > { %v319_v29 = vpop.f32.mrf.mxu1 }
  0xd7   : > { %v505_v30 = vpop.f32.mrf.mxu0  ;;  %v320_v35 = vadd.f32 %v319_v29, %v276_v28 }
  0xd8   : > { %v513_v31 = vpop.f32.mrf.mxu1 }
  0xd9   : > { %v279_v32 = vpop.f32.mrf.mxu0 }
  0xda   : > { %v322_v33 = vpop.f32.mrf.mxu1 }
  0xdb   : > { %v506_v34 = vpop.f32.mrf.mxu0 }
  0xdc   : > { %v514_v36 = vpop.f32.mrf.mxu1 }
  0xdd   : > { %v377_v37 = vpop.f32.mrf.mxu0 }
  0xde   : > { %v383_v39 = vadd.f32 %v377_v37, %v320_v35 }
  0xdf   : > { %v521_v40 = vpop.f32.mrf.mxu0 }
  0xe0   : > { %v391_v41 = vadd.f32 %v485_v38, %v383_v39 }
  0xe1   : > { %v380_v42 = vpop.f32.mrf.mxu0 }
  0xe2   : > { %v392_v43 = vmax.f32 %v391_v41, 0.0 }
  0xe3   : > { %v522_v44 = vpop.f32.mrf.mxu0 }
  0xe4   : > { %v393_v45 = vpack.c.bf16 %v392_v43, %v392_v43 }
  0xe6   : > { %395 = vst.msk [vmem:[%s215_s29] sm:$0xf] %vm394_vm2, %v393_v45 }
  0xe7 PF: > { %s14_s15 = sadd.s32 1, %s542_s15  }
  0xe8   : > { %p11_p4 = scmp.ge.s32.totalorder %s14_s15, 4  }
  0xea   :  { %13 = sbr.rel (!%p11_p4) target bundleno = 1 (0x1), region = 71 }

// kernel: multi_stage_forward.10
= control target key start
LH: loop header
LB: loop body
LE: loop exit
PB: predicated region body
PF: predicated region fallthrough
CT: control target
= control target key end

     0   :  { %s676_s18 = smov 0   ;;  %s780_s0 = inlined_call_operand.vmem [shape: bf16[2,20,32], index: 0, kind: input, shape index: {}]   ;;  %s781_s1 = inlined_call_operand.vmem [shape: f32[3,32,32], index: 1, kind: input, shape index: {}]   ;;  %s782_s2 = inlined_call_operand.vmem [shape: f32[1,32], index: 2, kind: input, shape index: {}]   ;;  %s783_s3 = inlined_call_operand.vmem [shape: f32[32,32], index: 3, kind: input, shape index: {}]   ;;  %s784_s4 = inlined_call_operand.vmem [shape: f32[1,32], index: 4, kind: input, shape index: {}]   ;;  %s785_s5 = inlined_call_operand.vmem [shape: bf16[2,16,32], index: 5, kind: output, shape index: {}]  }
   0x1 LB: > { %s547_s19 = sadd.s32 4294967295, %s642_s18   ;;  %p551_p0 = scmp.ge.s32.totalorder %s642_s18, 1  ;;  %s642_s18 = sphi %s676_s18, %s15_s18  }
   0x2   : > { %p187_p1 = scmp.lt.s32.totalorder %s642_s18, 3 }
   0x4   : > { %p188_p2 = pnand %p551_p0, %p187_p1 }
   0x5   : > { %p693_p3 = scmp.lt.s32.totalorder (!%p188_p2), %s547_s19, 1 }
   0x6   : > { %191 = sbr.rel (%p188_p2) target bundleno = 438 (0x1b6), region = 40 }
   0xb   : > { %v559_v0 = vld [vmem:[%s781_s1 + $0x30] sm:$0xff]  ;;  %v560_v1 = vld [vmem:[%s781_s1 + $0x38] sm:$0xff]  ;;  %v644_v3 = vmov 0.0   ;;  %v557_v6 = vld [vmem:[%s781_s1 + $0x20] sm:$0xff]  ;;  %vm645_vm0 = vmmov 0   ;;  %s788_s19 = smov (!%p693_p3, %s547_s19), 1 }
   0xc   : > { %v235_v2 = vld [vmem:[%s781_s1 + $0x10] sm:$0xff]  ;;  %590 = vmatprep.subr.bf16.mxu0 %v644_v3  ;;  %v246_v4 = vpack.c.bf16 %v560_v1, %v559_v0  ;;  %598 = vmatprep.subr.bf16.mxu1 %v644_v3  ;;  %v236_v5 = vld [vmem:[%s781_s1 + $0x18] sm:$0xff]  ;;  %v558_v7 = vld [vmem:[%s781_s1 + $0x28] sm:$0xff]  ;;  %s622_s12 = smul.u32 12, %s788_s19  ;;  %vm253_vm1 = vcmask 261120   ;;  %vm249_vm2 = vcmask 1046528  }
   0xd   : > { %v238_v8 = vpack.c.bf16 %v236_v5, %v235_v2  ;;  %v233_v9 = vld [vmem:[%s781_s1] sm:$0xff]  ;;  %v234_v10 = vld [vmem:[%s781_s1 + $0x8] sm:$0xff]  ;;  %594 = vmatprep.mubr.msk.bf16.mxu0 %vm645_vm0, %v644_v3  ;;  %602 = vmatprep.mubr.msk.bf16.mxu1 %vm645_vm0, %v644_v3  ;;  %v245_v11 = vpack.c.bf16 %v558_v7, %v557_v6  ;;  %v565_v13 = vld [vmem:[%s781_s1 + $0x50] sm:$0xff]  ;;  %vm349_vm3 = vcmask 1045504   ;;  %s575_s13 = sshll.u32 %s788_s19, 3  ;;  %vm489_vm4 = vcmask 257024  }
   0xe   : > { %591 = vmatpush3.bf16.msra.mxu0 %v246_v4  ;;  %v237_v12 = vpack.c.bf16 %v234_v10, %v233_v9  ;;  %s219_s15 = scalar_lea.vmem %s780_s0, %s622_s12  ;;  %v566_v16 = vld [vmem:[%s781_s1 + $0x58] sm:$0xff]  ;;  %v563_v21 = vld [vmem:[%s781_s1 + $0x40] sm:$0xff]  ;;  %v564_v22 = vld [vmem:[%s781_s1 + $0x48] sm:$0xff]  ;;  %s224_s16 = scalar_lea.vmem %s785_s5, %s575_s13 }
   0xf   : > { %599 = vmatpush3.bf16.msra.mxu1 %v238_v8  ;;  %592 = vmatprep.subr.bf16.mxu0 %v644_v3  ;;  %v725_v14 = vld [vmem:[%s219_s15] sm:$0xff]   ;;  %v727_v15 = vld [vmem:[%s219_s15 + $0x8] sm:$0x3]  ;;  %v348_v20 = vpack.c.bf16 %v566_v16, %v565_v13  ;;  %v347_v24 = vpack.c.bf16 %v564_v22, %v563_v21  ;;  %v413_v28 = vld [vmem:[%s783_s3 + $0x10] sm:$0xff] }
  0x10   : > { %600 = vmatprep.subr.bf16.mxu1 %v644_v3  ;;  %v556_v17 = vcombine.low %v727_v15, %v727_v15  ;;  %v250_v18 = vrot.slane %v725_v14, 1  ;;  %v350_v25 = vrot.slane %v725_v14, 2  ;;  %v414_v29 = vld [vmem:[%s783_s3 + $0x18] sm:$0xff]  ;;  %v411_v31 = vld [vmem:[%s783_s3] sm:$0xff]  ;;  %v412_v32 = vld [vmem:[%s783_s3 + $0x8] sm:$0xff]  ;;  %v229_v56 = vunpack.c.l.bf16 %v725_v14 }
  0x11   : > { %v416_v30 = vpack.c.bf16 %v414_v29, %v413_v28  ;;  %v415_v33 = vpack.c.bf16 %v412_v32, %v411_v31  ;;  %v568_v45 = vld [vmem:[%s782_s2] ss:$0 sm:$0xff]  ;;  %v230_v57 = vunpack.c.h.bf16 %v725_v14  ;;  %v231_v60 = vunpack.c.l.bf16 %v727_v15 }
  0x12   : > { %593 = vmatpush3.bf16.msra.mxu0 %v245_v11  ;;  %v251_v19 = vrot.slane %v556_v17, 1  ;;  %v351_v26 = vrot.slane %v556_v17, 2  ;;  %v472_v58 = vrot.slane %v229_v56, 2  ;;  %v569_v61 = vld [vmem:[%s784_s4] ss:$0 sm:$0xff] }
  0x13   : > { %601 = vmatpush3.bf16.msra.mxu1 %v237_v12  ;;  %606 = vmatprep.subr.bf16.mxu0 %v644_v3  ;;  %v473_v59 = vrot.slane %v230_v57, 2  ;;  %v475_v0 = vrot.slane %v231_v60, 2 }
  0x14   : > { %614 = vmatprep.subr.bf16.mxu1 %v644_v3  ;;  %v252_v23 = vsel %vm249_vm2, %v250_v18, %v251_v19  ;;  %v352_v27 = vsel %vm349_vm3, %v350_v25, %v351_v26 }
  0x15   : > { %595 = vmatmul.mubr.msk.bf16.vlgmr.msra.gmra.mxu0 %vm253_vm1, %v252_v23  ;;  %v474_v63 = vsel %vm349_vm3, %v472_v58, %v473_v59  ;;  %v476_v5 = vsel %vm349_vm3, %v473_v59, %v475_v0 }
  0x16   : > { %603 = vmatmul.mubr.msk.bf16.vlgmr.msra.gmra.mxu1 %vm253_vm1, %v725_v14  ;;  %607 = vmatpush3.bf16.msra.mxu0 %v348_v20 }
  0x17   : > { %618 = vmatprep.mubr.msk.bf16.mxu1 %vm645_vm0, %v644_v3  ;;  %610 = vmatprep.mubr.msk.bf16.mxu0 %vm645_vm0, %v644_v3 }
  0x18   : > { %608 = vmatprep.subr.bf16.mxu0 %v644_v3  ;;  %615 = vmatpush3.bf16.msra.mxu1 %v416_v30 }
  0x19   : > { %616 = vmatprep.subr.bf16.mxu1 %v644_v3 }
  0x1a   : > { %609 = vmatpush3.bf16.msra.mxu0 %v347_v24 }
  0x1c   : > { %617 = vmatpush3.bf16.msra.mxu1 %v415_v33 }
  0x1d   : > { %611 = vmatmul.mubr.msk.bf16.vlgmr.msra.gmra.mxu0 %vm253_vm1, %v352_v27 }
  0xd5   : > { %v291_v35 = vpop.f32.mrf.mxu0 }
  0xd6   : > { %v335_v34 = vpop.f32.mrf.mxu1 }
  0xd7   : > { %v596_v37 = vpop.f32.mrf.mxu0  ;;  %v336_v42 = vadd.f32 %v335_v34, %v291_v35 }
  0xd8   : > { %v604_v36 = vpop.f32.mrf.mxu1 }
  0xd9   : > { %v294_v39 = vpop.f32.mrf.mxu0 }
  0xda   : > { %v338_v38 = vpop.f32.mrf.mxu1 }
  0xdb   : > { %v597_v41 = vpop.f32.mrf.mxu0  ;;  %v339_v47 = vadd.f32 %v338_v38, %v294_v39 }
  0xdc   : > { %v605_v40 = vpop.f32.mrf.mxu1 }
  0xdd   : > { %v390_v43 = vpop.f32.mrf.mxu0 }
  0xde   : > { %v397_v44 = vadd.f32 %v390_v43, %v336_v42 }
  0xdf   : > { %v612_v46 = vpop.f32.mrf.mxu0 }
  0xe0   : > { %v406_v49 = vadd.f32 %v568_v45, %v397_v44 }
  0xe1   : > { %v393_v48 = vpop.f32.mrf.mxu0 }
  0xe2   : > { %v398_v50 = vadd.f32 %v393_v48, %v339_v47  ;;  %v408_v53 = vmax.f32 %v406_v49, 0.0 }
  0xe3   : > { %v613_v51 = vpop.f32.mrf.mxu0 }
  0xe4   : > { %v407_v52 = vadd.f32 %v568_v45, %v398_v50 }
  0xe6   : > { %v409_v54 = vmax.f32 %v407_v52, 0.0 }
  0xe8   : > { %v410_v55 = vpack.c.bf16 %v409_v54, %v408_v53 }
  0xea   : > { %619 = vmatmul.mubr.msk.bf16.vlgmr.msra.gmra.mxu1 %vm253_vm1, %v410_v55 }
 0x1aa   : > { %v461_v62 = vpop.f32.mrf.mxu1 }
 0x1ab   : > { %v462_v1 = vadd.f32 %v569_v61, %v461_v62 }
 0x1ac   : > { %v620_v2 = vpop.f32.mrf.mxu1 }
 0x1ad   : > { %v479_v3 = vadd.f32 %v474_v63, %v462_v1 }
 0x1ae   : > { %v464_v4 = vpop.f32.mrf.mxu1 }
 0x1af   : > { %v576_v6 = vpack.c.bf16 %v479_v3, %v479_v3  ;;  %v465_v7 = vadd.f32 %v569_v61, %v464_v4 }
 0x1b0   : > { %v621_v8 = vpop.f32.mrf.mxu1 }
 0x1b1   : > { %490 = vst.msk [vmem:[%s224_s16] sm:$0xf] %vm489_vm4, %v576_v6  ;;  %v480_v9 = vadd.f32 %v476_v5, %v465_v7 }
 0x1b3   : > { %v577_v10 = vpack.c.bf16 %v480_v9, %v480_v9 }
 0x1b5   : > { %491 = vst.msk [vmem:[%s224_s16 + $0x4] sm:$0xf] %vm489_vm4, %v577_v10 }
 0x1b6 PF: > { %s15_s18 = sadd.s32 1, %s642_s18  }
 0x1b7   : > { %p12_p4 = scmp.ge.s32.totalorder %s15_s18, 4  }
 0x1b9   :  { %14 = sbr.rel (!%p12_p4) target bundleno = 1 (0x1), region = 72 }

// kernel: multi_stage_forward.12
= control target key start
LH: loop header
LB: loop body
LE: loop exit
PB: predicated region body
PF: predicated region fallthrough
CT: control target
= control target key end

     0   :  { %s340_s12 = smov 0   ;;  %s363_s0 = inlined_call_operand.vmem [shape: bf16[2,8,8], index: 0, kind: input, shape index: {}]   ;;  %s364_s1 = inlined_call_operand.vmem [shape: f32[8,32], index: 1, kind: input, shape index: {}]   ;;  %s365_s2 = inlined_call_operand.vmem [shape: f32[1,32], index: 2, kind: input, shape index: {}]   ;;  %s366_s3 = inlined_call_operand.vmem [shape: bf16[2,8,32], index: 3, kind: output, shape index: {}]  }
   0x1 LB: > { %s281_s13 = sadd.s32 4294967295, %s316_s12   ;;  %p285_p0 = scmp.ge.s32.totalorder %s316_s12, 1  ;;  %s316_s12 = sphi %s340_s12, %s13_s12  }
   0x2   : > { %p136_p1 = scmp.lt.s32.totalorder %s316_s12, 3 }
   0x4   : > { %p137_p2 = pnand %p285_p0, %p136_p1 }
   0x5   : > { %p158_p3 = scmp.lt.s32.totalorder (!%p137_p2), %s281_s13, 1 }
   0x6   : > { %140 = sbr.rel (%p137_p2) target bundleno = 217 (0xd9), region = 32 }
   0xb   : > { %v168_v0 = vld [vmem:[%s364_s1] sm:$0xff]  ;;  %vm181_vm0 = vcmask 1043456   ;;  %v318_v1 = vmov 0.0   ;;  %vm319_vm1 = vmmov 0   ;;  %s368_s13 = smov (!%p158_p3, %s281_s13), 1  ;;  %vm177_vm2 = vcmask 64512  }
   0xc   : > { %294 = vmatprep.subr.bf16.mxu0 %v318_v1  ;;  %v169_v2 = vpack.c.bf16 %v168_v0, %v168_v0  ;;  %296 = vmatprep.mubr.msk.bf16.mxu0 %vm319_vm1, %v318_v1  ;;  %s286_s16 = sshll.u32 %s368_s13, 2  ;;  %v288_v5 = vld [vmem:[%s365_s2] ss:$0 sm:$0xff]  ;;  %vm226_vm3 = vcmask 257024  }
   0xd   : > { %s161_s19 = scalar_lea.vmem %s363_s0, %s286_s16  ;;  %s165_s24 = scalar_lea.vmem %s366_s3, %s286_s16 }
   0xe   : > { %v183_v3 = vsel %vm181_vm0, %v169_v2, 0  ;;  %v167_v4 = vld [vmem:[%s161_s19] sm:$0xf] }
   0xf   : > { %295 = vmatpush3.bf16.msra.mxu0 %v183_v3 }
  0x12   : > { %297 = vmatmul.mubr.msk.bf16.vlgmr.msra.gmra.mxu0 %vm177_vm2, %v167_v4 }
  0xd2   : > { %v219_v6 = vpop.f32.mrf.mxu0 }
  0xd3   : > { %v220_v7 = vadd.f32 %v288_v5, %v219_v6 }
  0xd4   : > { %v298_v8 = vpop.f32.mrf.mxu0 }
  0xd5   : > { %v225_v9 = vpack.c.bf16 %v220_v7, %v220_v7 }
  0xd6   : > { %v222_v10 = vpop.f32.mrf.mxu0 }
  0xd7   : > { %227 = vst.msk [vmem:[%s165_s24] sm:$0xf] %vm226_vm3, %v225_v9 }
  0xd8   : > { %v299_v11 = vpop.f32.mrf.mxu0 }
  0xd9 PF: > { %s13_s12 = sadd.s32 1, %s316_s12  }
  0xda   : > { %p10_p4 = scmp.ge.s32.totalorder %s13_s12, 4  }
  0xdc   :  { %12 = sbr.rel (!%p10_p4) target bundleno = 1 (0x1), region = 62 }

// kernel: multi_stage_forward.13
= control target key start
LH: loop header
LB: loop body
LE: loop exit
PB: predicated region body
PF: predicated region fallthrough
CT: control target
= control target key end

     0   :  { %s643_s18 = smov 0   ;;  %s732_s0 = inlined_call_operand.vmem [shape: bf16[2,10,32], index: 0, kind: input, shape index: {}]   ;;  %s733_s1 = inlined_call_operand.vmem [shape: f32[3,32,32], index: 1, kind: input, shape index: {}]   ;;  %s734_s2 = inlined_call_operand.vmem [shape: f32[1,32], index: 2, kind: input, shape index: {}]   ;;  %s735_s3 = inlined_call_operand.vmem [shape: f32[32,32], index: 3, kind: input, shape index: {}]   ;;  %s736_s4 = inlined_call_operand.vmem [shape: f32[1,32], index: 4, kind: input, shape index: {}]   ;;  %s737_s5 = inlined_call_operand.vmem [shape: bf16[2,8,32], index: 5, kind: output, shape index: {}]  }
   0x1 LB: > { %s520_s19 = sadd.s32 4294967295, %s609_s18   ;;  %p524_p0 = scmp.ge.s32.totalorder %s609_s18, 1  ;;  %s609_s18 = sphi %s643_s18, %s15_s18  }
   0x2   : > { %p187_p1 = scmp.lt.s32.totalorder %s609_s18, 3 }
   0x4   : > { %p188_p2 = pnand %p524_p0, %p187_p1 }
   0x5   : > { %p660_p3 = scmp.lt.s32.totalorder (!%p188_p2), %s520_s19, 1 }
   0x6   : > { %191 = sbr.rel (%p188_p2) target bundleno = 432 (0x1b0), region = 40 }
   0xb   : > { %v532_v0 = vld [vmem:[%s733_s1 + $0x30] sm:$0xff]  ;;  %v533_v1 = vld [vmem:[%s733_s1 + $0x38] sm:$0xff]  ;;  %v611_v3 = vmov 0.0   ;;  %v530_v6 = vld [vmem:[%s733_s1 + $0x20] sm:$0xff]  ;;  %vm612_vm0 = vmmov 0   ;;  %s740_s19 = smov (!%p660_p3, %s520_s19), 1 }
   0xc   : > { %v231_v2 = vld [vmem:[%s733_s1 + $0x10] sm:$0xff]  ;;  %559 = vmatprep.subr.bf16.mxu0 %v611_v3  ;;  %v242_v4 = vpack.c.bf16 %v533_v1, %v532_v0  ;;  %567 = vmatprep.subr.bf16.mxu1 %v611_v3  ;;  %v232_v5 = vld [vmem:[%s733_s1 + $0x18] sm:$0xff]  ;;  %v531_v7 = vld [vmem:[%s733_s1 + $0x28] sm:$0xff]  ;;  %s546_s12 = sshll.u32 %s740_s19, 3  ;;  %vm250_vm1 = vcmask 261120   ;;  %vm458_vm2 = vcmask 1046528  }
   0xd   : > { %v234_v8 = vpack.c.bf16 %v232_v5, %v231_v2  ;;  %v229_v9 = vld [vmem:[%s733_s1] sm:$0xff]  ;;  %v230_v10 = vld [vmem:[%s733_s1 + $0x8] sm:$0xff]  ;;  %563 = vmatprep.mubr.msk.bf16.mxu0 %vm612_vm0, %v611_v3  ;;  %571 = vmatprep.mubr.msk.bf16.mxu1 %vm612_vm0, %v611_v3  ;;  %v241_v11 = vpack.c.bf16 %v531_v7, %v530_v6  ;;  %s218_s15 = scalar_lea.vmem %s732_s0, %s546_s12  ;;  %v538_v19 = vld [vmem:[%s733_s1 + $0x50] sm:$0xff]  ;;  %s527_s13 = sshll.u32 %s740_s19, 2  ;;  %vm465_vm3 = vcmask 257024  }
   0xe   : > { %560 = vmatpush3.bf16.msra.mxu0 %v242_v4  ;;  %v233_v12 = vpack.c.bf16 %v230_v10, %v229_v9  ;;  %v224_v13 = vld [vmem:[%s218_s15] sm:$0xf]  ;;  %v225_v14 = vld [vmem:[%s218_s15 + $0x4] sm:$0x1]  ;;  %v539_v20 = vld [vmem:[%s733_s1 + $0x58] sm:$0xff]  ;;  %s222_s16 = scalar_lea.vmem %s737_s5, %s527_s13 }
   0xf   : > { %568 = vmatpush3.bf16.msra.mxu1 %v234_v8  ;;  %561 = vmatprep.subr.bf16.mxu0 %v611_v3  ;;  %v529_v15 = vcombine.low %v224_v13, %v225_v14  ;;  %v528_v16 = vcombine.low %v224_v13, %v224_v13  ;;  %v343_v22 = vpack.c.bf16 %v539_v20, %v538_v19  ;;  %v536_v24 = vld [vmem:[%s733_s1 + $0x40] sm:$0xff]  ;;  %v537_v25 = vld [vmem:[%s733_s1 + $0x48] sm:$0xff]  ;;  %v402_v28 = vld [vmem:[%s735_s3 + $0x10] sm:$0xff]  ;;  %v226_v52 = vunpack.c.l.bf16 %v224_v13 }
  0x10   : > { %569 = vmatprep.subr.bf16.mxu1 %v611_v3  ;;  %v342_v26 = vpack.c.bf16 %v537_v25, %v536_v24  ;;  %v403_v29 = vld [vmem:[%s735_s3 + $0x18] sm:$0xff]  ;;  %v400_v31 = vld [vmem:[%s735_s3] sm:$0xff]  ;;  %v401_v32 = vld [vmem:[%s735_s3 + $0x8] sm:$0xff]  ;;  %v227_v53 = vunpack.c.l.bf16 %v225_v14 }
  0x11   : > { %v244_v17 = vshrl.u32 %v529_v15, 16  ;;  %v246_v18 = vshll.u32 %v529_v15, 16  ;;  %v345_v27 = vrot.slane %v529_v15, 1  ;;  %v405_v30 = vpack.c.bf16 %v403_v29, %v402_v28  ;;  %v541_v44 = vld [vmem:[%s734_s2] ss:$0 sm:$0xff] }
  0x12   : > { %562 = vmatpush3.bf16.msra.mxu0 %v241_v11  ;;  %v404_v33 = vpack.c.bf16 %v401_v32, %v400_v31  ;;  %v459_v54 = vrot.slane %v226_v52, 1  ;;  %v460_v55 = vrot.slane %v227_v53, 1  ;;  %v542_v56 = vld [vmem:[%s736_s4] ss:$0 sm:$0xff] }
  0x13   : > { %570 = vmatpush3.bf16.msra.mxu1 %v233_v12  ;;  %575 = vmatprep.subr.bf16.mxu0 %v611_v3  ;;  %v248_v21 = vrot.slane %v246_v18, 1 }
  0x14   : > { %583 = vmatprep.subr.bf16.mxu1 %v611_v3  ;;  %v461_v58 = vsel %vm458_vm2, %v459_v54, %v460_v55 }
  0x15   : > { %v249_v23 = vor.u32 %v248_v21, %v244_v17 }
  0x16   : > { %572 = vmatmul.mubr.msk.bf16.vlgmr.msra.gmra.mxu1 %vm250_vm1, %v528_v16 }
  0x17   : > { %587 = vmatprep.mubr.msk.bf16.mxu1 %vm612_vm0, %v611_v3  ;;  %564 = vmatmul.mubr.msk.bf16.vlgmr.msra.gmra.mxu0 %vm250_vm1, %v249_v23 }
  0x18   : > { %576 = vmatpush3.bf16.msra.mxu0 %v343_v22  ;;  %579 = vmatprep.mubr.msk.bf16.mxu0 %vm612_vm0, %v611_v3 }
  0x19   : > { %577 = vmatprep.subr.bf16.mxu0 %v611_v3  ;;  %584 = vmatpush3.bf16.msra.mxu1 %v405_v30 }
  0x1a   : > { %585 = vmatprep.subr.bf16.mxu1 %v611_v3 }
  0x1c   : > { %578 = vmatpush3.bf16.msra.mxu0 %v342_v26 }
  0x1d   : > { %586 = vmatpush3.bf16.msra.mxu1 %v404_v33 }
  0x1f   : > { %580 = vmatmul.mubr.msk.bf16.vlgmr.msra.gmra.mxu0 %vm250_vm1, %v345_v27 }
  0xd6   : > { %v331_v34 = vpop.f32.mrf.mxu1 }
  0xd7   : > { %v288_v36 = vpop.f32.mrf.mxu0 }
  0xd8   : > { %v573_v35 = vpop.f32.mrf.mxu1  ;;  %v332_v42 = vadd.f32 %v331_v34, %v288_v36 }
  0xd9   : > { %v565_v38 = vpop.f32.mrf.mxu0 }
  0xda   : > { %v334_v37 = vpop.f32.mrf.mxu1 }
  0xdb   : > { %v291_v40 = vpop.f32.mrf.mxu0 }
  0xdc   : > { %v574_v39 = vpop.f32.mrf.mxu1 }
  0xdd   : > { %v566_v41 = vpop.f32.mrf.mxu0 }
  0xdf   : > { %v383_v43 = vpop.f32.mrf.mxu0 }
  0xe0   : > { %v389_v45 = vadd.f32 %v383_v43, %v332_v42 }
  0xe1   : > { %v581_v46 = vpop.f32.mrf.mxu0 }
  0xe2   : > { %v397_v47 = vadd.f32 %v541_v44, %v389_v45 }
  0xe3   : > { %v386_v48 = vpop.f32.mrf.mxu0 }
  0xe4   : > { %v398_v49 = vmax.f32 %v397_v47, 0.0 }
  0xe5   : > { %v582_v50 = vpop.f32.mrf.mxu0 }
  0xe6   : > { %v399_v51 = vpack.c.bf16 %v398_v49, %v398_v49 }
  0xe8   : > { %588 = vmatmul.mubr.msk.bf16.vlgmr.msra.gmra.mxu1 %vm250_vm1, %v399_v51 }
 0x1a8   : > { %v450_v57 = vpop.f32.mrf.mxu1 }
 0x1a9   : > { %v451_v59 = vadd.f32 %v542_v56, %v450_v57 }
 0x1aa   : > { %v589_v60 = vpop.f32.mrf.mxu1 }
 0x1ab   : > { %v463_v61 = vadd.f32 %v461_v58, %v451_v59 }
 0x1ac   : > { %v453_v62 = vpop.f32.mrf.mxu1 }
 0x1ad   : > { %v464_v63 = vpack.c.bf16 %v463_v61, %v463_v61 }
 0x1ae   : > { %v590_v0 = vpop.f32.mrf.mxu1 }
 0x1af   : > { %466 = vst.msk [vmem:[%s222_s16] sm:$0xf] %vm465_vm3, %v464_v63 }
 0x1b0 PF: > { %s15_s18 = sadd.s32 1, %s609_s18  }
 0x1b1   : > { %p12_p4 = scmp.ge.s32.totalorder %s15_s18, 4  }
 0x1b3   :  { %14 = sbr.rel (!%p12_p4) target bundleno = 1 (0x1), region = 72 }

// kernel: multi_stage_forward.14
= control target key start
LH: loop header
LB: loop body
LE: loop exit
PB: predicated region body
PF: predicated region fallthrough
CT: control target
= control target key end

     0   :  { %s637_s18 = smov 0   ;;  %s726_s0 = inlined_call_operand.vmem [shape: bf16[2,12,32], index: 0, kind: input, shape index: {}]   ;;  %s727_s1 = inlined_call_operand.vmem [shape: f32[3,32,32], index: 1, kind: input, shape index: {}]   ;;  %s728_s2 = inlined_call_operand.vmem [shape: f32[1,32], index: 2, kind: input, shape index: {}]   ;;  %s729_s3 = inlined_call_operand.vmem [shape: f32[32,32], index: 3, kind: input, shape index: {}]   ;;  %s730_s4 = inlined_call_operand.vmem [shape: f32[1,32], index: 4, kind: input, shape index: {}]   ;;  %s731_s5 = inlined_call_operand.vmem [shape: bf16[2,8,32], index: 5, kind: output, shape index: {}]  }
   0x1 LB: > { %s514_s19 = sadd.s32 4294967295, %s603_s18   ;;  %p518_p0 = scmp.ge.s32.totalorder %s603_s18, 1  ;;  %s603_s18 = sphi %s637_s18, %s15_s18  }
   0x2   : > { %p187_p1 = scmp.lt.s32.totalorder %s603_s18, 3 }
   0x4   : > { %p188_p2 = pnand %p518_p0, %p187_p1 }
   0x5   : > { %p654_p3 = scmp.lt.s32.totalorder (!%p188_p2), %s514_s19, 1 }
   0x6   : > { %191 = sbr.rel (%p188_p2) target bundleno = 430 (0x1ae), region = 40 }
   0xb   : > { %v526_v0 = vld [vmem:[%s727_s1 + $0x30] sm:$0xff]  ;;  %v527_v1 = vld [vmem:[%s727_s1 + $0x38] sm:$0xff]  ;;  %v605_v3 = vmov 0.0   ;;  %v524_v6 = vld [vmem:[%s727_s1 + $0x20] sm:$0xff]  ;;  %vm606_vm0 = vmmov 0   ;;  %s734_s19 = smov (!%p654_p3, %s514_s19), 1 }
   0xc   : > { %v231_v2 = vld [vmem:[%s727_s1 + $0x10] sm:$0xff]  ;;  %553 = vmatprep.subr.bf16.mxu0 %v605_v3  ;;  %v242_v4 = vpack.c.bf16 %v527_v1, %v526_v0  ;;  %561 = vmatprep.subr.bf16.mxu1 %v605_v3  ;;  %v232_v5 = vld [vmem:[%s727_s1 + $0x18] sm:$0xff]  ;;  %v525_v7 = vld [vmem:[%s727_s1 + $0x28] sm:$0xff]  ;;  %s540_s12 = sshll.u32 %s734_s19, 3  ;;  %vm245_vm1 = vcmask 261120   ;;  %vm452_vm2 = vcmask 1045504  }
   0xd   : > { %v234_v8 = vpack.c.bf16 %v232_v5, %v231_v2  ;;  %v229_v9 = vld [vmem:[%s727_s1] sm:$0xff]  ;;  %v230_v10 = vld [vmem:[%s727_s1 + $0x8] sm:$0xff]  ;;  %557 = vmatprep.mubr.msk.bf16.mxu0 %vm606_vm0, %v605_v3  ;;  %565 = vmatprep.mubr.msk.bf16.mxu1 %vm606_vm0, %v605_v3  ;;  %v241_v11 = vpack.c.bf16 %v525_v7, %v524_v6  ;;  %s218_s15 = scalar_lea.vmem %s726_s0, %s540_s12  ;;  %v532_v13 = vld [vmem:[%s727_s1 + $0x50] sm:$0xff]  ;;  %s521_s13 = sshll.u32 %s734_s19, 2  ;;  %vm459_vm3 = vcmask 257024  }
   0xe   : > { %554 = vmatpush3.bf16.msra.mxu0 %v242_v4  ;;  %v233_v12 = vpack.c.bf16 %v230_v10, %v229_v9  ;;  %v533_v14 = vld [vmem:[%s727_s1 + $0x58] sm:$0xff]  ;;  %v224_v15 = vld [vmem:[%s218_s15] sm:$0xf]  ;;  %v225_v16 = vld [vmem:[%s218_s15 + $0x4] sm:$0x3]  ;;  %s222_s16 = scalar_lea.vmem %s731_s5, %s521_s13 }
   0xf   : > { %562 = vmatpush3.bf16.msra.mxu1 %v234_v8  ;;  %555 = vmatprep.subr.bf16.mxu0 %v605_v3  ;;  %v523_v17 = vcombine.low %v224_v15, %v225_v16  ;;  %v522_v18 = vcombine.low %v224_v15, %v224_v15  ;;  %v338_v19 = vpack.c.bf16 %v533_v14, %v532_v13  ;;  %v530_v21 = vld [vmem:[%s727_s1 + $0x40] sm:$0xff]  ;;  %v531_v22 = vld [vmem:[%s727_s1 + $0x48] sm:$0xff]  ;;  %v396_v25 = vld [vmem:[%s729_s3 + $0x10] sm:$0xff]  ;;  %v226_v49 = vunpack.c.l.bf16 %v224_v15 }
  0x10   : > { %563 = vmatprep.subr.bf16.mxu1 %v605_v3  ;;  %v337_v23 = vpack.c.bf16 %v531_v22, %v530_v21  ;;  %v397_v26 = vld [vmem:[%s729_s3 + $0x18] sm:$0xff]  ;;  %v394_v28 = vld [vmem:[%s729_s3] sm:$0xff]  ;;  %v395_v29 = vld [vmem:[%s729_s3 + $0x8] sm:$0xff]  ;;  %v227_v50 = vunpack.c.l.bf16 %v225_v16 }
  0x11   : > { %v244_v20 = vrot.slane %v523_v17, 1  ;;  %v339_v24 = vrot.slane %v523_v17, 2  ;;  %v399_v27 = vpack.c.bf16 %v397_v26, %v396_v25  ;;  %v398_v30 = vpack.c.bf16 %v395_v29, %v394_v28  ;;  %v535_v41 = vld [vmem:[%s728_s2] ss:$0 sm:$0xff] }
  0x12   : > { %556 = vmatpush3.bf16.msra.mxu0 %v241_v11  ;;  %v453_v51 = vrot.slane %v226_v49, 2  ;;  %v454_v52 = vrot.slane %v227_v50, 2  ;;  %v536_v53 = vld [vmem:[%s730_s4] ss:$0 sm:$0xff] }
  0x13   : > { %564 = vmatpush3.bf16.msra.mxu1 %v233_v12  ;;  %569 = vmatprep.subr.bf16.mxu0 %v605_v3 }
  0x14   : > { %577 = vmatprep.subr.bf16.mxu1 %v605_v3  ;;  %v455_v55 = vsel %vm452_vm2, %v453_v51, %v454_v52 }
  0x15   : > { %558 = vmatmul.mubr.msk.bf16.vlgmr.msra.gmra.mxu0 %vm245_vm1, %v244_v20 }
  0x16   : > { %566 = vmatmul.mubr.msk.bf16.vlgmr.msra.gmra.mxu1 %vm245_vm1, %v522_v18  ;;  %570 = vmatpush3.bf16.msra.mxu0 %v338_v19 }
  0x17   : > { %573 = vmatprep.mubr.msk.bf16.mxu0 %vm606_vm0, %v605_v3  ;;  %571 = vmatprep.subr.bf16.mxu0 %v605_v3 }
  0x18   : > { %581 = vmatprep.mubr.msk.bf16.mxu1 %vm606_vm0, %v605_v3  ;;  %578 = vmatpush3.bf16.msra.mxu1 %v399_v27 }
  0x19   : > { %579 = vmatprep.subr.bf16.mxu1 %v605_v3 }
  0x1a   : > { %572 = vmatpush3.bf16.msra.mxu0 %v337_v23 }
  0x1c   : > { %580 = vmatpush3.bf16.msra.mxu1 %v398_v30 }
  0x1d   : > { %574 = vmatmul.mubr.msk.bf16.vlgmr.msra.gmra.mxu0 %vm245_vm1, %v339_v24 }
  0xd5   : > { %v283_v31 = vpop.f32.mrf.mxu0 }
  0xd6   : > { %v326_v32 = vpop.f32.mrf.mxu1 }
  0xd7   : > { %v559_v33 = vpop.f32.mrf.mxu0  ;;  %v327_v39 = vadd.f32 %v326_v32, %v283_v31 }
  0xd8   : > { %v567_v34 = vpop.f32.mrf.mxu1 }
  0xd9   : > { %v286_v35 = vpop.f32.mrf.mxu0 }
  0xda   : > { %v329_v36 = vpop.f32.mrf.mxu1 }
  0xdb   : > { %v560_v37 = vpop.f32.mrf.mxu0 }
  0xdc   : > { %v568_v38 = vpop.f32.mrf.mxu1 }
  0xdd   : > { %v377_v40 = vpop.f32.mrf.mxu0 }
  0xde   : > { %v383_v42 = vadd.f32 %v377_v40, %v327_v39 }
  0xdf   : > { %v575_v43 = vpop.f32.mrf.mxu0 }
  0xe0   : > { %v391_v44 = vadd.f32 %v535_v41, %v383_v42 }
  0xe1   : > { %v380_v45 = vpop.f32.mrf.mxu0 }
  0xe2   : > { %v392_v46 = vmax.f32 %v391_v44, 0.0 }
  0xe3   : > { %v576_v47 = vpop.f32.mrf.mxu0 }
  0xe4   : > { %v393_v48 = vpack.c.bf16 %v392_v46, %v392_v46 }
  0xe6   : > { %582 = vmatmul.mubr.msk.bf16.vlgmr.msra.gmra.mxu1 %vm245_vm1, %v393_v48 }
 0x1a6   : > { %v444_v54 = vpop.f32.mrf.mxu1 }
 0x1a7   : > { %v445_v56 = vadd.f32 %v536_v53, %v444_v54 }
 0x1a8   : > { %v583_v57 = vpop.f32.mrf.mxu1 }
 0x1a9   : > { %v457_v58 = vadd.f32 %v455_v55, %v445_v56 }
 0x1aa   : > { %v447_v59 = vpop.f32.mrf.mxu1 }
 0x1ab   : > { %v458_v60 = vpack.c.bf16 %v457_v58, %v457_v58 }
 0x1ac   : > { %v584_v61 = vpop.f32.mrf.mxu1 }
 0x1ad   : > { %460 = vst.msk [vmem:[%s222_s16] sm:$0xf] %vm459_vm3, %v458_v60 }
 0x1ae PF: > { %s15_s18 = sadd.s32 1, %s603_s18  }
 0x1af   : > { %p12_p4 = scmp.ge.s32.totalorder %s15_s18, 4  }
 0x1b1   :  { %14 = sbr.rel (!%p12_p4) target bundleno = 1 (0x1), region = 72 }

// kernel: multi_stage_forward.15
= control target key start
LH: loop header
LB: loop body
LE: loop exit
PB: predicated region body
PF: predicated region fallthrough
CT: control target
= control target key end

     0   :  { %s555_s15 = smov 0   ;;  %s624_s0 = inlined_call_operand.vmem [shape: bf16[2,5,32], index: 0, kind: input, shape index: {}]   ;;  %s625_s1 = inlined_call_operand.vmem [shape: bf16[2,5,32], index: 1, kind: input, shape index: {}]   ;;  %s626_s2 = inlined_call_operand.vmem [shape: f32[3,32,8], index: 2, kind: input, shape index: {}]   ;;  %s627_s3 = inlined_call_operand.vmem [shape: f32[1,8], index: 3, kind: input, shape index: {}]   ;;  %s628_s4 = inlined_call_operand.vmem [shape: bf16[2,4,8], index: 4, kind: output, shape index: {}]  }
   0x1 LB: > { %s451_s16 = sadd.s32 4294967295, %s526_s15   ;;  %p455_p0 = scmp.ge.s32.totalorder %s526_s15, 1  ;;  %s526_s15 = sphi %s555_s15, %s14_s15  }
   0x2   : > { %p170_p1 = scmp.lt.s32.totalorder %s526_s15, 3 }
   0x4   : > { %p171_p2 = pnand %p455_p0, %p170_p1 }
   0x5   : > { %p198_p3 = scmp.lt.s32.totalorder (!%p171_p2), %s451_s16, 1 }
   0x6   : > { %174 = sbr.rel (%p171_p2) target bundleno = 231 (0xe7), region = 36 }
   0xb   : > { %v463_v0 = vld [vmem:[%s626_s2 + $0x30] sm:$0xff]  ;;  %v464_v1 = vld [vmem:[%s626_s2 + $0x38] sm:$0xff]  ;;  %v528_v3 = vmov 0.0   ;;  %v461_v6 = vld [vmem:[%s626_s2 + $0x20] sm:$0xff]  ;;  %vm529_vm0 = vmmov 0   ;;  %s630_s16 = smov (!%p198_p3, %s451_s16), 1 }
   0xc   : > { %v218_v2 = vld [vmem:[%s626_s2 + $0x10] sm:$0xff]  ;;  %484 = vmatprep.subr.bf16.mxu0 %v528_v3  ;;  %v229_v4 = vpack.c.bf16 %v464_v1, %v463_v0  ;;  %492 = vmatprep.subr.bf16.mxu1 %v528_v3  ;;  %v219_v5 = vld [vmem:[%s626_s2 + $0x18] sm:$0xff]  ;;  %v462_v7 = vld [vmem:[%s626_s2 + $0x28] sm:$0xff]  ;;  %s456_s7 = sshll.u32 %s630_s16, 2  ;;  %vm230_vm1 = vcmask 261120   ;;  %s458_s26 = sshll.u32 %s630_s16, 1 }
   0xd   : > { %v221_v8 = vpack.c.bf16 %v219_v5, %v218_v2  ;;  %v216_v9 = vld [vmem:[%s626_s2] sm:$0xff]  ;;  %v217_v10 = vld [vmem:[%s626_s2 + $0x8] sm:$0xff]  ;;  %488 = vmatprep.mubr.msk.bf16.mxu0 %vm529_vm0, %v528_v3  ;;  %496 = vmatprep.mubr.msk.bf16.mxu1 %vm529_vm0, %v528_v3  ;;  %v228_v11 = vpack.c.bf16 %v462_v7, %v461_v6  ;;  %v469_v13 = vld [vmem:[%s626_s2 + $0x50] sm:$0xff]  ;;  %s205_s14 = scalar_lea.vmem %s625_s1, %s456_s7  ;;  %s201_s19 = scalar_lea.vmem %s624_s0, %s456_s7  ;;  %vm384_vm2 = vcmask 58368  }
   0xe   : > { %485 = vmatpush3.bf16.msra.mxu0 %v229_v4  ;;  %v220_v12 = vpack.c.bf16 %v217_v10, %v216_v9  ;;  %v470_v14 = vld [vmem:[%s626_s2 + $0x58] sm:$0xff]  ;;  %v518_v15 = vld [vmem:[%s205_s14] ss:$0 sps:$4 sm:$0x77]   ;;  %v468_v19 = vld [vmem:[%s626_s2 + $0x48] sm:$0xff]  ;;  %s209_s29 = scalar_lea.vmem %s628_s4, %s458_s26 }
   0xf   : > { %493 = vmatpush3.bf16.msra.mxu1 %v221_v8  ;;  %486 = vmatprep.subr.bf16.mxu0 %v528_v3  ;;  %v519_v16 = vld [vmem:[%s201_s19] ss:$0 sps:$4 sm:$0x77]   ;;  %v323_v17 = vpack.c.bf16 %v470_v14, %v469_v13 }
  0x10   : > { %494 = vmatprep.subr.bf16.mxu1 %v528_v3  ;;  %v467_v18 = vld [vmem:[%s626_s2 + $0x40] sm:$0xff]  ;;  %v326_v20 = vshll.u32 %v519_v16, 16  ;;  %v324_v21 = vshrl.u32 %v519_v16, 16 }
  0x11   : > { %v322_v23 = vpack.c.bf16 %v468_v19, %v467_v18  ;;  %v472_v35 = vld [vmem:[%s627_s3] ss:$0 sm:$0xff] }
  0x12   : > { %487 = vmatpush3.bf16.msra.mxu0 %v228_v11  ;;  %v328_v22 = vrot.slane %v326_v20, 1 }
  0x13   : > { %495 = vmatpush3.bf16.msra.mxu1 %v220_v12  ;;  %500 = vmatprep.subr.bf16.mxu0 %v528_v3 }
  0x14   : > { %v329_v24 = vor.u32 %v328_v22, %v324_v21 }
  0x15   : > { %489 = vmatmul.mubr.msk.bf16.vlgmr.msra.gmra.mxu0 %vm230_vm1, %v518_v15 }
  0x16   : > { %497 = vmatmul.mubr.msk.bf16.vlgmr.msra.gmra.mxu1 %vm230_vm1, %v519_v16  ;;  %501 = vmatpush3.bf16.msra.mxu0 %v323_v17 }
  0x17   : > { %502 = vmatprep.subr.bf16.mxu0 %v528_v3  ;;  %504 = vmatprep.mubr.msk.bf16.mxu0 %vm529_vm0, %v528_v3 }
  0x1a   : > { %503 = vmatpush3.bf16.msra.mxu0 %v322_v23 }
  0x1d   : > { %505 = vmatmul.mubr.msk.bf16.vlgmr.msra.gmra.mxu0 %vm230_vm1, %v329_v24 }
  0xd5   : > { %v268_v25 = vpop.f32.mrf.mxu0 }
  0xd6   : > { %v311_v26 = vpop.f32.mrf.mxu1 }
  0xd7   : > { %v490_v27 = vpop.f32.mrf.mxu0  ;;  %v312_v32 = vadd.f32 %v311_v26, %v268_v25 }
  0xd8   : > { %v498_v28 = vpop.f32.mrf.mxu1 }
  0xd9   : > { %v271_v29 = vpop.f32.mrf.mxu0 }
  0xda   : > { %v314_v30 = vpop.f32.mrf.mxu1 }
  0xdb   : > { %v491_v31 = vpop.f32.mrf.mxu0 }
  0xdc   : > { %v499_v33 = vpop.f32.mrf.mxu1 }
  0xdd   : > { %v367_v34 = vpop.f32.mrf.mxu0 }
  0xde   : > { %v373_v36 = vadd.f32 %v367_v34, %v312_v32 }
  0xdf   : > { %v506_v37 = vpop.f32.mrf.mxu0 }
  0xe0   : > { %v381_v38 = vadd.f32 %v472_v35, %v373_v36 }
  0xe1   : > { %v370_v39 = vpop.f32.mrf.mxu0 }
  0xe2   : > { %v382_v40 = vmax.f32 %v381_v38, 0.0 }
  0xe3   : > { %v507_v41 = vpop.f32.mrf.mxu0 }
  0xe4   : > { %v383_v42 = vpack.c.bf16 %v382_v40, %v382_v40 }
  0xe6   : > { %385 = vst.msk [vmem:[%s209_s29] sm:$0x3] %vm384_vm2, %v383_v42 }
  0xe7 PF: > { %s14_s15 = sadd.s32 1, %s526_s15  }
  0xe8   : > { %p11_p4 = scmp.ge.s32.totalorder %s14_s15, 4  }
  0xea   :  { %13 = sbr.rel (!%p11_p4) target bundleno = 1 (0x1), region = 71 }

</bundles_post_ra>
